<compile_context>
chip_gen: v7x
topology: tpu7x:2x2x1
jax: 0.10.0
libtpu: 0.0.40
codegen_flags: <defaults>
</compile_context>

<pallas_src>
import math
from functools import partial

import jax
import jax.numpy as jnp
from jax import lax
from jax.experimental import pallas as pl
from jax.experimental.pallas import tpu as pltpu


def _gelu_erf(x):
    """Exact-erf GELU; erf via Abramowitz & Stegun 7.1.26 polynomial (|err| <= 1.5e-7).
    The divide runs on the EUP (pl.reciprocal approx + one Newton step, ~1e-6 accurate).
    TODO(synk): lax.erf has no guaranteed Mosaic lowering, so the polynomial runs in-kernel."""
    u = x * (1.0 / math.sqrt(2.0))
    au = jnp.abs(u)
    den = 1.0 + 0.3275911 * au
    t = pl.reciprocal(den, approx=True)
    t = t * (2.0 - den * t)                      # Newton refinement of the approx reciprocal
    poly = t * (0.254829592 + t * (-0.284496736 + t * (1.421413741
               + t * (-1.453152027 + t * 1.061405429))))
    erf_abs = 1.0 - poly * jnp.exp(-(au * au))
    erf_u = jnp.where(u >= 0.0, erf_abs, -erf_abs)
    return 0.5 * x * (1.0 + erf_u)


def _layer_norm(x, gamma, beta, eps):
    """One-pass LayerNorm: var = E[x^2] - mu^2; gamma folded into the rsqrt scale."""
    mu = jnp.mean(x, axis=-1, keepdims=True)
    ms = jnp.mean(x * x, axis=-1, keepdims=True)
    s = lax.rsqrt(ms - mu * mu + eps) * gamma
    return (x - mu) * s + beta


def fused_encoder_layer_kernel(x_ref, kpb_ref, pe_ref,
                               w_in_ref, b_in_ref,
                               wqkv_ref, bqkv_ref, wo_ref, bo_ref,
                               g1_ref, be1_ref,
                               w1_ref, b1_ref, w2_ref, b2_ref,
                               g2_ref, be2_ref,
                               wout_ref, bout_ref,
                               out_ref, emb_ref,
                               h_sc, ctx_sc,
                               *, n_heads, eps, sqrt_d, b_blk):
    """One grid step = (one batch block, one encoder layer). `h_sc` carries activations across
    the layer grid axis; input projection at l==0, GELU + output head at l==last."""
    l = pl.program_id(1)
    n_layers = pl.num_programs(1)
    _, S, F = x_ref.shape
    D = pe_ref.shape[1]
    hd = D // n_heads
    rows = b_blk * S
    bf16 = jnp.bfloat16

    # ---- layer 0: input projection * sqrt(d_model) + learnable PE -> persistent carry ----
    @pl.when(l == 0)
    def _():
        x = x_ref[...].reshape(rows, F).astype(bf16)
        h0 = jnp.dot(x, w_in_ref[...], preferred_element_type=jnp.float32) + b_in_ref[...]
        h_sc[...] = h0 * sqrt_d + pe_ref[...]               # pe pre-tiled to (rows, D)

    h = h_sc[...]                                           # (rows, D) f32

    # ---- fused QKV projection for the whole batch block (scale folded into W_q/b_q) ----
    qkv = (jnp.dot(h.astype(bf16), wqkv_ref[0], preferred_element_type=jnp.float32)
           + bqkv_ref[0])                                   # (rows, 3D) f32

    # ---- per-sequence, per-head attention; contexts written straight to VMEM scratch ----
    for bi in range(b_blk):                                 # static unroll over batch block
        r0 = bi * S
        kpb_b = jnp.broadcast_to(kpb_ref[bi], (S, S))       # hoisted out of the head loop
        for hh in range(n_heads):                           # static unroll over heads
            c0 = hh * hd
            qh = qkv[r0:r0 + S, c0:c0 + hd].astype(bf16)
            kh = qkv[r0:r0 + S, D + c0:D + c0 + hd].astype(bf16)
            vh = qkv[r0:r0 + S, 2 * D + c0:2 * D + c0 + hd].astype(bf16)
            sc = jnp.einsum('qe,ke->qk', qh, kh,
                            preferred_element_type=jnp.float32) + kpb_b
            sc = sc - jnp.max(sc, axis=-1, keepdims=True)
            p = jnp.exp(sc)
            # approx reciprocal: ~1e-3 rel. error per softmax row (intentional perf tradeoff)
            p = p * pl.reciprocal(jnp.sum(p, axis=-1, keepdims=True), approx=True)
            ctx_sc[r0:r0 + S, c0:c0 + hd] = jnp.dot(
                p.astype(bf16), vh, preferred_element_type=jnp.float32)

    # ---- output projection + residual + LayerNorm1 (post-norm) ----
    attn = (jnp.dot(ctx_sc[...].astype(bf16), wo_ref[0], preferred_element_type=jnp.float32)
            + bo_ref[0])
    y = _layer_norm(h + attn, g1_ref[0], be1_ref[0], eps)

    # ---- ReLU feed-forward + residual + LayerNorm2 ----
    h1 = jnp.maximum(
        jnp.dot(y.astype(bf16), w1_ref[0], preferred_element_type=jnp.float32) + b1_ref[0],
        0.0)
    ff = (jnp.dot(h1.astype(bf16), w2_ref[0], preferred_element_type=jnp.float32)
          + b2_ref[0])
    h_new = _layer_norm(y + ff, g2_ref[0], be2_ref[0], eps)
    h_sc[...] = h_new

    # ---- last layer: exact-erf GELU + lane-dense (128-padded) output head ----
    @pl.when(l == n_layers - 1)
    def _():
        emb = _gelu_erf(h_new)
        emb_ref[...] = emb.reshape(b_blk, S, D)
        out = (jnp.dot(emb.astype(bf16), wout_ref[...], preferred_element_type=jnp.float32)
               + bout_ref[...])
        out_ref[...] = out.reshape(b_blk, S, out_ref.shape[2])


def init_params(key, *, feat_dim, d_model, n_heads, num_layers, dim_ff, max_len):
    """Deterministic synthetic parameters mirroring the PyTorch module, pre-transposed to
    (in, out) for right-multiplication."""
    def u(k, shape, a):
        return jax.random.uniform(k, shape, jnp.float32, minval=-a, maxval=a)

    keys = jax.random.split(key, 3 + num_layers)
    a_in = 1.0 / math.sqrt(max(feat_dim, 1))
    a_d = 1.0 / math.sqrt(d_model)
    a_ff = 1.0 / math.sqrt(dim_ff)

    params = {
        'w_in': u(jax.random.fold_in(keys[0], 0), (feat_dim, d_model), a_in),  # Linear(feat,d).T
        'b_in': u(jax.random.fold_in(keys[0], 1), (1, d_model), a_in),
        'pe': u(keys[1], (max_len, d_model), 0.02),                            # LearnablePE
        'w_out': u(jax.random.fold_in(keys[2], 0), (d_model, feat_dim), a_d),  # Linear(d,feat).T
        'b_out': u(jax.random.fold_in(keys[2], 1), (1, feat_dim), a_d),
        'layers': [],
    }
    for li in range(num_layers):
        sub = jax.random.split(keys[3 + li], 8)
        params['layers'].append(dict(
            w_qkv=u(sub[0], (d_model, 3 * d_model), a_d),   # MHA in_proj_weight.T (q|k|v)
            b_qkv=u(sub[1], (1, 3 * d_model), a_d),
            w_o=u(sub[2], (d_model, d_model), a_d),         # MHA out_proj.weight.T
            b_o=u(sub[3], (1, d_model), a_d),
            g1=jnp.ones((1, d_model), jnp.float32), be1=jnp.zeros((1, d_model), jnp.float32),
            w1=u(sub[4], (d_model, dim_ff), a_d), b1=u(sub[5], (1, dim_ff), a_d),
            w2=u(sub[6], (dim_ff, d_model), a_ff), b2=u(sub[7], (1, d_model), a_ff),
            g2=jnp.ones((1, d_model), jnp.float32), be2=jnp.zeros((1, d_model), jnp.float32),
        ))
    return params


def pack_params(params, *, d_model, n_heads):
    """Kernel-ready repack: stack per-layer weights along a leading layer axis (streamed via
    layer-indexed BlockSpecs), fold 1/sqrt(head_dim) into W_q/b_q, zero-pad the output head to
    a lane-dense 128-wide last dim, cast matmul weights to bf16 (f32 accumulation in-kernel)."""
    hd = d_model // n_heads
    scale = 1.0 / math.sqrt(hd)

    stack = lambda name: jnp.stack([l[name] for l in params['layers']])
    bf16 = lambda a: a.astype(jnp.bfloat16)

    w_qkv = stack('w_qkv').at[:, :, :d_model].multiply(scale)   # fold attention scale into Q
    b_qkv = stack('b_qkv').at[:, :, :d_model].multiply(scale)

    feat_dim = params['w_out'].shape[1]
    out_pad = max(128, ((feat_dim + 127) // 128) * 128)
    pad = out_pad - feat_dim
    w_out = jnp.pad(params['w_out'], ((0, 0), (0, pad)))
    b_out = jnp.pad(params['b_out'], ((0, 0), (0, pad)))

    return {
        'w_in': bf16(params['w_in']), 'b_in': params['b_in'], 'pe': params['pe'],
        'w_qkv': bf16(w_qkv), 'b_qkv': b_qkv,
        'w_o': bf16(stack('w_o')), 'b_o': stack('b_o'),
        'g1': stack('g1'), 'be1': stack('be1'),
        'w1': bf16(stack('w1')), 'b1': stack('b1'),
        'w2': bf16(stack('w2')), 'b2': stack('b2'),
        'g2': stack('g2'), 'be2': stack('be2'),
        'w_out': bf16(w_out), 'b_out': b_out,
    }


def _blk_bytes(shape, dtype):
    """Rough per-block VMEM bytes with (8,128) tile padding on the last two dims."""
    s = [int(d) for d in shape]
    s[-1] = -(-s[-1] // 128) * 128
    if len(s) >= 2:
        s[-2] = -(-s[-2] // 8) * 8
    n = 1
    for d in s:
        n *= d
    return n * jnp.dtype(dtype).itemsize


@partial(jax.jit, static_argnames=('d_model', 'n_heads', 'num_layers'))
def transformer_encoder_forward(x, padding_masks, packed, *, d_model, n_heads, num_layers):
    """x: (B, S, feat_dim); padding_masks: (B, S) bool, True = keep. Returns (output, embedding)."""
    B, S, feat_dim = x.shape
    out_pad = packed['w_out'].shape[1]

    # --- batch blocking: target matmul M = b_blk*S >= 256 so the MXU tiles are filled ---
    b_blk = max(1, min(B, -(-256 // S)))
    nb = -(-B // b_blk)
    b_pad = nb * b_blk
    if b_pad != B:
        x = jnp.pad(x, ((0, b_pad - B), (0, 0), (0, 0)))
        padding_masks = jnp.pad(padding_masks, ((0, b_pad - B), (0, 0)), constant_values=True)
    rows = b_blk * S

    # src_key_padding_mask = ~padding_masks -> additive bias: 0 keep, -1e9 ignore.
    # (PyTorch uses -inf; a large finite sentinel is numerically equivalent after softmax.
    #  Fully-masked rows degenerate to uniform attention instead of NaN — benign divergence.)
    kpb = jnp.where(padding_masks, 0.0, -1e9).astype(jnp.float32)[:, None, :]   # (b_pad, 1, S)
    pe_tiled = jnp.tile(packed['pe'][:S], (b_blk, 1))                            # (rows, D)

    def const_spec(a):      # invariant across the whole grid
        n = a.ndim
        return pl.BlockSpec(a.shape, lambda b, l: (0,) * n)

    def layer_spec(a):      # streamed per layer along the inner 'arbitrary' grid axis
        n = a.ndim
        return pl.BlockSpec((1,) + tuple(a.shape[1:]), lambda b, l: (l,) + (0,) * (n - 1))

    # --- VMEM footprint estimate (double-buffered blocks + scratch) -> vmem_limit_bytes ---
    per_layer_names = ('w_qkv', 'b_qkv', 'w_o', 'b_o', 'g1', 'be1',
                       'w1', 'b1', 'w2', 'b2', 'g2', 'be2')
    const_names = ('w_in', 'b_in', 'w_out', 'b_out')
    est = (_blk_bytes((b_blk, S, feat_dim), jnp.float32)
           + _blk_bytes((b_blk, 1, S), jnp.float32)
           + _blk_bytes((rows, d_model), jnp.float32)
           + sum(_blk_bytes(packed[n].shape, packed[n].dtype) for n in const_names)
           + sum(_blk_bytes((1,) + tuple(packed[n].shape[1:]), packed[n].dtype)
                 for n in per_layer_names)
           + _blk_bytes((b_blk, S, out_pad), jnp.float32)
           + _blk_bytes((b_blk, S, d_model), jnp.float32))
    est = 2 * est + 2 * _blk_bytes((rows, d_model), jnp.float32)
    vmem_limit = int(min(max(est * 3 // 2 + (4 << 20), 24 << 20), 64 << 20))

    out_padded, emb_full = pl.pallas_call(
        partial(fused_encoder_layer_kernel, n_heads=n_heads, eps=1e-5,
                sqrt_d=math.sqrt(d_model), b_blk=b_blk),
        grid=(nb, num_layers),
        out_shape=(jax.ShapeDtypeStruct((b_pad, S, out_pad), jnp.float32),
                   jax.ShapeDtypeStruct((b_pad, S, d_model), jnp.float32)),
        in_specs=[
            pl.BlockSpec((b_blk, S, feat_dim), lambda b, l: (b, 0, 0)),   # x (per batch block)
            pl.BlockSpec((b_blk, 1, S), lambda b, l: (b, 0, 0)),          # key-padding bias
            const_spec(pe_tiled),
            const_spec(packed['w_in']), const_spec(packed['b_in']),
            layer_spec(packed['w_qkv']), layer_spec(packed['b_qkv']),
            layer_spec(packed['w_o']), layer_spec(packed['b_o']),
            layer_spec(packed['g1']), layer_spec(packed['be1']),
            layer_spec(packed['w1']), layer_spec(packed['b1']),
            layer_spec(packed['w2']), layer_spec(packed['b2']),
            layer_spec(packed['g2']), layer_spec(packed['be2']),
            const_spec(packed['w_out']), const_spec(packed['b_out']),
        ],
        out_specs=(pl.BlockSpec((b_blk, S, out_pad), lambda b, l: (b, 0, 0)),
                   pl.BlockSpec((b_blk, S, d_model), lambda b, l: (b, 0, 0))),
        scratch_shapes=[pltpu.VMEM((rows, d_model), jnp.float32),   # activation carry h
                        pltpu.VMEM((rows, d_model), jnp.float32)],  # per-layer attention ctx
        compiler_params=pltpu.CompilerParams(
            dimension_semantics=("parallel", "arbitrary"),
            vmem_limit_bytes=vmem_limit),
    )(x.astype(jnp.float32), kpb, pe_tiled,
      packed['w_in'], packed['b_in'],
      packed['w_qkv'], packed['b_qkv'], packed['w_o'], packed['b_o'],
      packed['g1'], packed['be1'], packed['w1'], packed['b1'],
      packed['w2'], packed['b2'], packed['g2'], packed['be2'],
      packed['w_out'], packed['b_out'])

    output = out_padded[:B, :, :feat_dim]   # strip batch + lane padding (layout plumbing)
    embedding = emb_full[:B]
    return output, embedding


if __name__ == "__main__":
    # Small shapes consistent with the module's forward.
    B, S = 2, 8
    feat_dim, d_model, n_heads = 4, 32, 4
    num_layers, dim_ff, max_len = 2, 64, 40

    key = jax.random.PRNGKey(0)
    k_params, k_x = jax.random.split(key)
    params = init_params(k_params, feat_dim=feat_dim, d_model=d_model, n_heads=n_heads,
                         num_layers=num_layers, dim_ff=dim_ff, max_len=max_len)
    packed = pack_params(params, d_model=d_model, n_heads=n_heads)

    x = jax.random.normal(k_x, (B, S, feat_dim), jnp.float32)
    padding_masks = jnp.array([[True] * S,
                               [True] * (S - 2) + [False] * 2])   # (B, S) bool, True = keep

    output, embedding = transformer_encoder_forward(
        x, padding_masks, packed, d_model=d_model, n_heads=n_heads, num_layers=num_layers)
    jax.block_until_ready((output, embedding))

    assert output.shape == (B, S, feat_dim)
    assert embedding.shape == (B, S, d_model)
    assert bool(jnp.isfinite(output).all()) and bool(jnp.isfinite(embedding).all())
    print("KERNEL_OK")
</pallas_src>

<mosaic_0001>
module attributes {stable_mosaic.version = 11 : i64} {
  func.func @fused_encoder_layer_kernel(%arg0: i32, %arg1: i32, %arg2: memref<2x8x4xf32, #tpu.memory_space<vmem>>, %arg3: memref<2x1x8xf32, #tpu.memory_space<vmem>>, %arg4: memref<16x32xf32, #tpu.memory_space<vmem>>, %arg5: memref<4x32xbf16, #tpu.memory_space<vmem>>, %arg6: memref<1x32xf32, #tpu.memory_space<vmem>>, %arg7: memref<1x32x96xbf16, #tpu.memory_space<vmem>>, %arg8: memref<1x1x96xf32, #tpu.memory_space<vmem>>, %arg9: memref<1x32x32xbf16, #tpu.memory_space<vmem>>, %arg10: memref<1x1x32xf32, #tpu.memory_space<vmem>>, %arg11: memref<1x1x32xf32, #tpu.memory_space<vmem>>, %arg12: memref<1x1x32xf32, #tpu.memory_space<vmem>>, %arg13: memref<1x32x64xbf16, #tpu.memory_space<vmem>>, %arg14: memref<1x1x64xf32, #tpu.memory_space<vmem>>, %arg15: memref<1x64x32xbf16, #tpu.memory_space<vmem>>, %arg16: memref<1x1x32xf32, #tpu.memory_space<vmem>>, %arg17: memref<1x1x32xf32, #tpu.memory_space<vmem>>, %arg18: memref<1x1x32xf32, #tpu.memory_space<vmem>>, %arg19: memref<32x128xbf16, #tpu.memory_space<vmem>>, %arg20: memref<1x128xf32, #tpu.memory_space<vmem>>, %arg21: memref<2x8x128xf32, #tpu.memory_space<vmem>>, %arg22: memref<2x8x32xf32, #tpu.memory_space<vmem>>, %arg23: memref<16x32xf32, #tpu.memory_space<vmem>>, %arg24: memref<16x32xf32, #tpu.memory_space<vmem>>) attributes {dimension_semantics = [#tpu.dimension_semantics<parallel>, #tpu.dimension_semantics<arbitrary>], iteration_bounds = array<i64: 1, 2>, scalar_prefetch = 0 : i64, scratch_operands = 2 : i64, tpu.core_type = #tpu.core_type<tc>, window_params = [{transform_indices = @transform_0, window_bounds = array<i64: 2, 8, 4>}, {transform_indices = @transform_1, window_bounds = array<i64: 2, 1, 8>}, {pipeline_mode = #tpu.pipeline_mode<synchronous>, transform_indices = @transform_2, window_bounds = array<i64: 16, 32>}, {pipeline_mode = #tpu.pipeline_mode<synchronous>, transform_indices = @transform_3, window_bounds = array<i64: 4, 32>}, {pipeline_mode = #tpu.pipeline_mode<synchronous>, transform_indices = @transform_4, window_bounds = array<i64: 1, 32>}, {transform_indices = @transform_5, window_bounds = array<i64: 1, 32, 96>}, {transform_indices = @transform_6, window_bounds = array<i64: 1, 1, 96>}, {transform_indices = @transform_7, window_bounds = array<i64: 1, 32, 32>}, {transform_indices = @transform_8, window_bounds = array<i64: 1, 1, 32>}, {transform_indices = @transform_9, window_bounds = array<i64: 1, 1, 32>}, {transform_indices = @transform_10, window_bounds = array<i64: 1, 1, 32>}, {transform_indices = @transform_11, window_bounds = array<i64: 1, 32, 64>}, {transform_indices = @transform_12, window_bounds = array<i64: 1, 1, 64>}, {transform_indices = @transform_13, window_bounds = array<i64: 1, 64, 32>}, {transform_indices = @transform_14, window_bounds = array<i64: 1, 1, 32>}, {transform_indices = @transform_15, window_bounds = array<i64: 1, 1, 32>}, {transform_indices = @transform_16, window_bounds = array<i64: 1, 1, 32>}, {pipeline_mode = #tpu.pipeline_mode<synchronous>, transform_indices = @transform_17, window_bounds = array<i64: 32, 128>}, {pipeline_mode = #tpu.pipeline_mode<synchronous>, transform_indices = @transform_18, window_bounds = array<i64: 1, 128>}, {transform_indices = @transform_19, window_bounds = array<i64: 2, 8, 128>}, {transform_indices = @transform_20, window_bounds = array<i64: 2, 8, 32>}]} {
    %c0_i32 = arith.constant 0 : i32
    %0 = arith.cmpi eq, %arg1, %c0_i32 : i32
    %1 = arith.extui %0 : i1 to i32
    %c0_i32_0 = arith.constant 0 : i32
    %2 = arith.cmpi ne, %1, %c0_i32_0 : i32
    scf.if %2 {
      %c0_107 = arith.constant 0 : index
      %c0_108 = arith.constant 0 : index
      %c0_109 = arith.constant 0 : index
      %273 = vector.load %arg2[%c0_107, %c0_108, %c0_109] : memref<2x8x4xf32, #tpu.memory_space<vmem>>, vector<2x8x4xf32>
      %274 = vector.shape_cast %273 : vector<2x8x4xf32> to vector<16x4xf32>
      %275 = arith.truncf %274 : vector<16x4xf32> to vector<16x4xbf16>
      %c0_110 = arith.constant 0 : index
      %c0_111 = arith.constant 0 : index
      %276 = vector.load %arg5[%c0_110, %c0_111] : memref<4x32xbf16, #tpu.memory_space<vmem>>, vector<4x32xbf16>
      %cst_112 = arith.constant dense<0.000000e+00> : vector<16x32xf32>
      %277 = tpu.matmul %275, %276, %cst_112 {dimension_numbers = #tpu.dot_dimension_numbers<[1], [0], [0], [1], [0, 0, 1, 1], [], []>} : vector<16x4xbf16>, vector<4x32xbf16>, vector<16x32xf32> -> vector<16x32xf32>
      %c0_113 = arith.constant 0 : index
      %c0_114 = arith.constant 0 : index
      %278 = vector.load %arg6[%c0_113, %c0_114] : memref<1x32xf32, #tpu.memory_space<vmem>>, vector<1x32xf32>
      %279 = vector.broadcast %278 : vector<1x32xf32> to vector<16x32xf32>
      %280 = arith.addf %277, %279 : vector<16x32xf32>
      %cst_115 = arith.constant 5.65685415 : f32
      %281 = vector.broadcast %cst_115 : f32 to vector<16x32xf32>
      %282 = arith.mulf %280, %281 : vector<16x32xf32>
      %c0_116 = arith.constant 0 : index
      %c0_117 = arith.constant 0 : index
      %283 = vector.load %arg4[%c0_116, %c0_117] : memref<16x32xf32, #tpu.memory_space<vmem>>, vector<16x32xf32>
      %284 = arith.addf %282, %283 : vector<16x32xf32>
      %c0_118 = arith.constant 0 : index
      %c0_119 = arith.constant 0 : index
      %285 = vector.load %arg23[%c0_118, %c0_119] : memref<16x32xf32, #tpu.memory_space<vmem>>, vector<16x32xf32>
      tpu.vector_store %arg23[%c0_118, %c0_119], %284 {strides = array<i32>} : memref<16x32xf32, #tpu.memory_space<vmem>>, vector<16x32xf32>,
    } else {
    }
    %c0 = arith.constant 0 : index
    %c0_1 = arith.constant 0 : index
    %3 = vector.load %arg23[%c0, %c0_1] : memref<16x32xf32, #tpu.memory_space<vmem>>, vector<16x32xf32>
    %4 = arith.truncf %3 : vector<16x32xf32> to vector<16x32xbf16>
    %c0_2 = arith.constant 0 : index
    %c0_3 = arith.constant 0 : index
    %c0_4 = arith.constant 0 : index
    %5 = vector.load %arg7[%c0_2, %c0_3, %c0_4] : memref<1x32x96xbf16, #tpu.memory_space<vmem>>, vector<1x32x96xbf16>
    %6 = vector.shape_cast %5 : vector<1x32x96xbf16> to vector<32x96xbf16>
    %cst = arith.constant dense<0.000000e+00> : vector<16x96xf32>
    %7 = tpu.matmul %4, %6, %cst {dimension_numbers = #tpu.dot_dimension_numbers<[1], [0], [0], [1], [0, 0, 1, 1], [], []>} : vector<16x32xbf16>, vector<32x96xbf16>, vector<16x96xf32> -> vector<16x96xf32>
    %c0_5 = arith.constant 0 : index
    %c0_6 = arith.constant 0 : index
    %c0_7 = arith.constant 0 : index
    %8 = vector.load %arg8[%c0_5, %c0_6, %c0_7] : memref<1x1x96xf32, #tpu.memory_space<vmem>>, vector<1x1x96xf32>
    %9 = vector.shape_cast %8 : vector<1x1x96xf32> to vector<1x96xf32>
    %10 = vector.broadcast %9 : vector<1x96xf32> to vector<16x96xf32>
    %11 = arith.addf %7, %10 : vector<16x96xf32>
    %c0_8 = arith.constant 0 : index
    %c0_9 = arith.constant 0 : index
    %c0_10 = arith.constant 0 : index
    %12 = vector.load %arg3[%c0_8, %c0_9, %c0_10] : memref<2x1x8xf32, #tpu.memory_space<vmem>>, vector<1x1x8xf32>
    %13 = vector.shape_cast %12 : vector<1x1x8xf32> to vector<1x8xf32>
    %14 = vector.shape_cast %13 : vector<1x8xf32> to vector<1x8xf32>
    %15 = vector.broadcast %14 : vector<1x8xf32> to vector<8x8xf32>
    %16 = vector.extract_strided_slice %11 {offsets = [0, 0], sizes = [8, 8], strides = [1, 1]} : vector<16x96xf32> to vector<8x8xf32>
    %17 = arith.truncf %16 : vector<8x8xf32> to vector<8x8xbf16>
    %18 = vector.extract_strided_slice %11 {offsets = [0, 32], sizes = [8, 8], strides = [1, 1]} : vector<16x96xf32> to vector<8x8xf32>
    %19 = arith.truncf %18 : vector<8x8xf32> to vector<8x8xbf16>
    %20 = vector.extract_strided_slice %11 {offsets = [0, 64], sizes = [8, 8], strides = [1, 1]} : vector<16x96xf32> to vector<8x8xf32>
    %21 = arith.truncf %20 : vector<8x8xf32> to vector<8x8xbf16>
    "tpu.trace_start"() <{level = 10 : i32, message = "qe,ke->qk"}> : () -> ()
    %cst_11 = arith.constant dense<0.000000e+00> : vector<8x8xf32>
    %22 = tpu.matmul %17, %19, %cst_11 {dimension_numbers = #tpu.dot_dimension_numbers<[1], [1], [0], [0], [0, 0, 1, 0], [], []>} : vector<8x8xbf16>, vector<8x8xbf16>, vector<8x8xf32> -> vector<8x8xf32>
    "tpu.trace_stop"() : () -> ()
    %23 = arith.addf %22, %15 : vector<8x8xf32>
    %cst_12 = arith.constant dense<0xFF800000> : vector<8xf32>
    %24 = vector.multi_reduction <maximumf>, %23, %cst_12 [1] : vector<8x8xf32> to vector<8xf32>
    %25 = vector.shape_cast %24 : vector<8xf32> to vector<8x1xf32>
    %26 = vector.broadcast %25 : vector<8x1xf32> to vector<8x8xf32>
    %27 = arith.subf %23, %26 : vector<8x8xf32>
    %28 = math.exp %27 : vector<8x8xf32>
    %cst_13 = arith.constant dense<0.000000e+00> : vector<8xf32>
    %29 = vector.multi_reduction <add>, %28, %cst_13 [1] : vector<8x8xf32> to vector<8xf32>
    %30 = vector.shape_cast %29 : vector<8xf32> to vector<8x1xf32>
    %31 = tpu.reciprocal %30 {approx = true} : vector<8x1xf32> -> vector<8x1xf32>
    %32 = vector.broadcast %31 : vector<8x1xf32> to vector<8x8xf32>
    %33 = arith.mulf %28, %32 : vector<8x8xf32>
    %34 = arith.truncf %33 : vector<8x8xf32> to vector<8x8xbf16>
    %cst_14 = arith.constant dense<0.000000e+00> : vector<8x8xf32>
    %35 = tpu.matmul %34, %21, %cst_14 {dimension_numbers = #tpu.dot_dimension_numbers<[1], [0], [0], [1], [0, 0, 1, 1], [], []>} : vector<8x8xbf16>, vector<8x8xbf16>, vector<8x8xf32> -> vector<8x8xf32>
    %c0_15 = arith.constant 0 : index
    %c0_16 = arith.constant 0 : index
    %36 = vector.load %arg24[%c0_15, %c0_16] : memref<16x32xf32, #tpu.memory_space<vmem>>, vector<8x8xf32>
    tpu.vector_store %arg24[%c0_15, %c0_16], %35 {strides = array<i32>} : memref<16x32xf32, #tpu.memory_space<vmem>>, vector<8x8xf32>,
    %37 = vector.extract_strided_slice %11 {offsets = [0, 8], sizes = [8, 8], strides = [1, 1]} : vector<16x96xf32> to vector<8x8xf32>
    %38 = arith.truncf %37 : vector<8x8xf32> to vector<8x8xbf16>
    %39 = vector.extract_strided_slice %11 {offsets = [0, 40], sizes = [8, 8], strides = [1, 1]} : vector<16x96xf32> to vector<8x8xf32>
    %40 = arith.truncf %39 : vector<8x8xf32> to vector<8x8xbf16>
    %41 = vector.extract_strided_slice %11 {offsets = [0, 72], sizes = [8, 8], strides = [1, 1]} : vector<16x96xf32> to vector<8x8xf32>
    %42 = arith.truncf %41 : vector<8x8xf32> to vector<8x8xbf16>
    "tpu.trace_start"() <{level = 10 : i32, message = "qe,ke->qk"}> : () -> ()
    %cst_17 = arith.constant dense<0.000000e+00> : vector<8x8xf32>
    %43 = tpu.matmul %38, %40, %cst_17 {dimension_numbers = #tpu.dot_dimension_numbers<[1], [1], [0], [0], [0, 0, 1, 0], [], []>} : vector<8x8xbf16>, vector<8x8xbf16>, vector<8x8xf32> -> vector<8x8xf32>
    "tpu.trace_stop"() : () -> ()
    %44 = arith.addf %43, %15 : vector<8x8xf32>
    %cst_18 = arith.constant dense<0xFF800000> : vector<8xf32>
    %45 = vector.multi_reduction <maximumf>, %44, %cst_18 [1] : vector<8x8xf32> to vector<8xf32>
    %46 = vector.shape_cast %45 : vector<8xf32> to vector<8x1xf32>
    %47 = vector.broadcast %46 : vector<8x1xf32> to vector<8x8xf32>
    %48 = arith.subf %44, %47 : vector<8x8xf32>
    %49 = math.exp %48 : vector<8x8xf32>
    %cst_19 = arith.constant dense<0.000000e+00> : vector<8xf32>
    %50 = vector.multi_reduction <add>, %49, %cst_19 [1] : vector<8x8xf32> to vector<8xf32>
    %51 = vector.shape_cast %50 : vector<8xf32> to vector<8x1xf32>
    %52 = tpu.reciprocal %51 {approx = true} : vector<8x1xf32> -> vector<8x1xf32>
    %53 = vector.broadcast %52 : vector<8x1xf32> to vector<8x8xf32>
    %54 = arith.mulf %49, %53 : vector<8x8xf32>
    %55 = arith.truncf %54 : vector<8x8xf32> to vector<8x8xbf16>
    %cst_20 = arith.constant dense<0.000000e+00> : vector<8x8xf32>
    %56 = tpu.matmul %55, %42, %cst_20 {dimension_numbers = #tpu.dot_dimension_numbers<[1], [0], [0], [1], [0, 0, 1, 1], [], []>} : vector<8x8xbf16>, vector<8x8xbf16>, vector<8x8xf32> -> vector<8x8xf32>
    %c0_21 = arith.constant 0 : index
    %c8 = arith.constant 8 : index
    %57 = vector.load %arg24[%c0_21, %c8] : memref<16x32xf32, #tpu.memory_space<vmem>>, vector<8x8xf32>
    tpu.vector_store %arg24[%c0_21, %c8], %56 {strides = array<i32>} : memref<16x32xf32, #tpu.memory_space<vmem>>, vector<8x8xf32>,
    %58 = vector.extract_strided_slice %11 {offsets = [0, 16], sizes = [8, 8], strides = [1, 1]} : vector<16x96xf32> to vector<8x8xf32>
    %59 = arith.truncf %58 : vector<8x8xf32> to vector<8x8xbf16>
    %60 = vector.extract_strided_slice %11 {offsets = [0, 48], sizes = [8, 8], strides = [1, 1]} : vector<16x96xf32> to vector<8x8xf32>
    %61 = arith.truncf %60 : vector<8x8xf32> to vector<8x8xbf16>
    %62 = vector.extract_strided_slice %11 {offsets = [0, 80], sizes = [8, 8], strides = [1, 1]} : vector<16x96xf32> to vector<8x8xf32>
    %63 = arith.truncf %62 : vector<8x8xf32> to vector<8x8xbf16>
    "tpu.trace_start"() <{level = 10 : i32, message = "qe,ke->qk"}> : () -> ()
    %cst_22 = arith.constant dense<0.000000e+00> : vector<8x8xf32>
    %64 = tpu.matmul %59, %61, %cst_22 {dimension_numbers = #tpu.dot_dimension_numbers<[1], [1], [0], [0], [0, 0, 1, 0], [], []>} : vector<8x8xbf16>, vector<8x8xbf16>, vector<8x8xf32> -> vector<8x8xf32>
    "tpu.trace_stop"() : () -> ()
    %65 = arith.addf %64, %15 : vector<8x8xf32>
    %cst_23 = arith.constant dense<0xFF800000> : vector<8xf32>
    %66 = vector.multi_reduction <maximumf>, %65, %cst_23 [1] : vector<8x8xf32> to vector<8xf32>
    %67 = vector.shape_cast %66 : vector<8xf32> to vector<8x1xf32>
    %68 = vector.broadcast %67 : vector<8x1xf32> to vector<8x8xf32>
    %69 = arith.subf %65, %68 : vector<8x8xf32>
    %70 = math.exp %69 : vector<8x8xf32>
    %cst_24 = arith.constant dense<0.000000e+00> : vector<8xf32>
    %71 = vector.multi_reduction <add>, %70, %cst_24 [1] : vector<8x8xf32> to vector<8xf32>
    %72 = vector.shape_cast %71 : vector<8xf32> to vector<8x1xf32>
    %73 = tpu.reciprocal %72 {approx = true} : vector<8x1xf32> -> vector<8x1xf32>
    %74 = vector.broadcast %73 : vector<8x1xf32> to vector<8x8xf32>
    %75 = arith.mulf %70, %74 : vector<8x8xf32>
    %76 = arith.truncf %75 : vector<8x8xf32> to vector<8x8xbf16>
    %cst_25 = arith.constant dense<0.000000e+00> : vector<8x8xf32>
    %77 = tpu.matmul %76, %63, %cst_25 {dimension_numbers = #tpu.dot_dimension_numbers<[1], [0], [0], [1], [0, 0, 1, 1], [], []>} : vector<8x8xbf16>, vector<8x8xbf16>, vector<8x8xf32> -> vector<8x8xf32>
    %c0_26 = arith.constant 0 : index
    %c16 = arith.constant 16 : index
    %78 = vector.load %arg24[%c0_26, %c16] : memref<16x32xf32, #tpu.memory_space<vmem>>, vector<8x8xf32>
    tpu.vector_store %arg24[%c0_26, %c16], %77 {strides = array<i32>} : memref<16x32xf32, #tpu.memory_space<vmem>>, vector<8x8xf32>,
    %79 = vector.extract_strided_slice %11 {offsets = [0, 24], sizes = [8, 8], strides = [1, 1]} : vector<16x96xf32> to vector<8x8xf32>
    %80 = arith.truncf %79 : vector<8x8xf32> to vector<8x8xbf16>
    %81 = vector.extract_strided_slice %11 {offsets = [0, 56], sizes = [8, 8], strides = [1, 1]} : vector<16x96xf32> to vector<8x8xf32>
    %82 = arith.truncf %81 : vector<8x8xf32> to vector<8x8xbf16>
    %83 = vector.extract_strided_slice %11 {offsets = [0, 88], sizes = [8, 8], strides = [1, 1]} : vector<16x96xf32> to vector<8x8xf32>
    %84 = arith.truncf %83 : vector<8x8xf32> to vector<8x8xbf16>
    "tpu.trace_start"() <{level = 10 : i32, message = "qe,ke->qk"}> : () -> ()
    %cst_27 = arith.constant dense<0.000000e+00> : vector<8x8xf32>
    %85 = tpu.matmul %80, %82, %cst_27 {dimension_numbers = #tpu.dot_dimension_numbers<[1], [1], [0], [0], [0, 0, 1, 0], [], []>} : vector<8x8xbf16>, vector<8x8xbf16>, vector<8x8xf32> -> vector<8x8xf32>
    "tpu.trace_stop"() : () -> ()
    %86 = arith.addf %85, %15 : vector<8x8xf32>
    %cst_28 = arith.constant dense<0xFF800000> : vector<8xf32>
    %87 = vector.multi_reduction <maximumf>, %86, %cst_28 [1] : vector<8x8xf32> to vector<8xf32>
    %88 = vector.shape_cast %87 : vector<8xf32> to vector<8x1xf32>
    %89 = vector.broadcast %88 : vector<8x1xf32> to vector<8x8xf32>
    %90 = arith.subf %86, %89 : vector<8x8xf32>
    %91 = math.exp %90 : vector<8x8xf32>
    %cst_29 = arith.constant dense<0.000000e+00> : vector<8xf32>
    %92 = vector.multi_reduction <add>, %91, %cst_29 [1] : vector<8x8xf32> to vector<8xf32>
    %93 = vector.shape_cast %92 : vector<8xf32> to vector<8x1xf32>
    %94 = tpu.reciprocal %93 {approx = true} : vector<8x1xf32> -> vector<8x1xf32>
    %95 = vector.broadcast %94 : vector<8x1xf32> to vector<8x8xf32>
    %96 = arith.mulf %91, %95 : vector<8x8xf32>
    %97 = arith.truncf %96 : vector<8x8xf32> to vector<8x8xbf16>
    %cst_30 = arith.constant dense<0.000000e+00> : vector<8x8xf32>
    %98 = tpu.matmul %97, %84, %cst_30 {dimension_numbers = #tpu.dot_dimension_numbers<[1], [0], [0], [1], [0, 0, 1, 1], [], []>} : vector<8x8xbf16>, vector<8x8xbf16>, vector<8x8xf32> -> vector<8x8xf32>
    %c0_31 = arith.constant 0 : index
    %c24 = arith.constant 24 : index
    %99 = vector.load %arg24[%c0_31, %c24] : memref<16x32xf32, #tpu.memory_space<vmem>>, vector<8x8xf32>
    tpu.vector_store %arg24[%c0_31, %c24], %98 {strides = array<i32>} : memref<16x32xf32, #tpu.memory_space<vmem>>, vector<8x8xf32>,
    %c1 = arith.constant 1 : index
    %c0_32 = arith.constant 0 : index
    %c0_33 = arith.constant 0 : index
    %100 = vector.load %arg3[%c1, %c0_32, %c0_33] : memref<2x1x8xf32, #tpu.memory_space<vmem>>, vector<1x1x8xf32>
    %101 = vector.shape_cast %100 : vector<1x1x8xf32> to vector<1x8xf32>
    %102 = vector.shape_cast %101 : vector<1x8xf32> to vector<1x8xf32>
    %103 = vector.broadcast %102 : vector<1x8xf32> to vector<8x8xf32>
    %104 = vector.extract_strided_slice %11 {offsets = [8, 0], sizes = [8, 8], strides = [1, 1]} : vector<16x96xf32> to vector<8x8xf32>
    %105 = arith.truncf %104 : vector<8x8xf32> to vector<8x8xbf16>
    %106 = vector.extract_strided_slice %11 {offsets = [8, 32], sizes = [8, 8], strides = [1, 1]} : vector<16x96xf32> to vector<8x8xf32>
    %107 = arith.truncf %106 : vector<8x8xf32> to vector<8x8xbf16>
    %108 = vector.extract_strided_slice %11 {offsets = [8, 64], sizes = [8, 8], strides = [1, 1]} : vector<16x96xf32> to vector<8x8xf32>
    %109 = arith.truncf %108 : vector<8x8xf32> to vector<8x8xbf16>
    "tpu.trace_start"() <{level = 10 : i32, message = "qe,ke->qk"}> : () -> ()
    %cst_34 = arith.constant dense<0.000000e+00> : vector<8x8xf32>
    %110 = tpu.matmul %105, %107, %cst_34 {dimension_numbers = #tpu.dot_dimension_numbers<[1], [1], [0], [0], [0, 0, 1, 0], [], []>} : vector<8x8xbf16>, vector<8x8xbf16>, vector<8x8xf32> -> vector<8x8xf32>
    "tpu.trace_stop"() : () -> ()
    %111 = arith.addf %110, %103 : vector<8x8xf32>
    %cst_35 = arith.constant dense<0xFF800000> : vector<8xf32>
    %112 = vector.multi_reduction <maximumf>, %111, %cst_35 [1] : vector<8x8xf32> to vector<8xf32>
    %113 = vector.shape_cast %112 : vector<8xf32> to vector<8x1xf32>
    %114 = vector.broadcast %113 : vector<8x1xf32> to vector<8x8xf32>
    %115 = arith.subf %111, %114 : vector<8x8xf32>
    %116 = math.exp %115 : vector<8x8xf32>
    %cst_36 = arith.constant dense<0.000000e+00> : vector<8xf32>
    %117 = vector.multi_reduction <add>, %116, %cst_36 [1] : vector<8x8xf32> to vector<8xf32>
    %118 = vector.shape_cast %117 : vector<8xf32> to vector<8x1xf32>
    %119 = tpu.reciprocal %118 {approx = true} : vector<8x1xf32> -> vector<8x1xf32>
    %120 = vector.broadcast %119 : vector<8x1xf32> to vector<8x8xf32>
    %121 = arith.mulf %116, %120 : vector<8x8xf32>
    %122 = arith.truncf %121 : vector<8x8xf32> to vector<8x8xbf16>
    %cst_37 = arith.constant dense<0.000000e+00> : vector<8x8xf32>
    %123 = tpu.matmul %122, %109, %cst_37 {dimension_numbers = #tpu.dot_dimension_numbers<[1], [0], [0], [1], [0, 0, 1, 1], [], []>} : vector<8x8xbf16>, vector<8x8xbf16>, vector<8x8xf32> -> vector<8x8xf32>
    %c8_38 = arith.constant 8 : index
    %c0_39 = arith.constant 0 : index
    %124 = vector.load %arg24[%c8_38, %c0_39] : memref<16x32xf32, #tpu.memory_space<vmem>>, vector<8x8xf32>
    tpu.vector_store %arg24[%c8_38, %c0_39], %123 {strides = array<i32>} : memref<16x32xf32, #tpu.memory_space<vmem>>, vector<8x8xf32>,
    %125 = vector.extract_strided_slice %11 {offsets = [8, 8], sizes = [8, 8], strides = [1, 1]} : vector<16x96xf32> to vector<8x8xf32>
    %126 = arith.truncf %125 : vector<8x8xf32> to vector<8x8xbf16>
    %127 = vector.extract_strided_slice %11 {offsets = [8, 40], sizes = [8, 8], strides = [1, 1]} : vector<16x96xf32> to vector<8x8xf32>
    %128 = arith.truncf %127 : vector<8x8xf32> to vector<8x8xbf16>
    %129 = vector.extract_strided_slice %11 {offsets = [8, 72], sizes = [8, 8], strides = [1, 1]} : vector<16x96xf32> to vector<8x8xf32>
    %130 = arith.truncf %129 : vector<8x8xf32> to vector<8x8xbf16>
    "tpu.trace_start"() <{level = 10 : i32, message = "qe,ke->qk"}> : () -> ()
    %cst_40 = arith.constant dense<0.000000e+00> : vector<8x8xf32>
    %131 = tpu.matmul %126, %128, %cst_40 {dimension_numbers = #tpu.dot_dimension_numbers<[1], [1], [0], [0], [0, 0, 1, 0], [], []>} : vector<8x8xbf16>, vector<8x8xbf16>, vector<8x8xf32> -> vector<8x8xf32>
    "tpu.trace_stop"() : () -> ()
    %132 = arith.addf %131, %103 : vector<8x8xf32>
    %cst_41 = arith.constant dense<0xFF800000> : vector<8xf32>
    %133 = vector.multi_reduction <maximumf>, %132, %cst_41 [1] : vector<8x8xf32> to vector<8xf32>
    %134 = vector.shape_cast %133 : vector<8xf32> to vector<8x1xf32>
    %135 = vector.broadcast %134 : vector<8x1xf32> to vector<8x8xf32>
    %136 = arith.subf %132, %135 : vector<8x8xf32>
    %137 = math.exp %136 : vector<8x8xf32>
    %cst_42 = arith.constant dense<0.000000e+00> : vector<8xf32>
    %138 = vector.multi_reduction <add>, %137, %cst_42 [1] : vector<8x8xf32> to vector<8xf32>
    %139 = vector.shape_cast %138 : vector<8xf32> to vector<8x1xf32>
    %140 = tpu.reciprocal %139 {approx = true} : vector<8x1xf32> -> vector<8x1xf32>
    %141 = vector.broadcast %140 : vector<8x1xf32> to vector<8x8xf32>
    %142 = arith.mulf %137, %141 : vector<8x8xf32>
    %143 = arith.truncf %142 : vector<8x8xf32> to vector<8x8xbf16>
    %cst_43 = arith.constant dense<0.000000e+00> : vector<8x8xf32>
    %144 = tpu.matmul %143, %130, %cst_43 {dimension_numbers = #tpu.dot_dimension_numbers<[1], [0], [0], [1], [0, 0, 1, 1], [], []>} : vector<8x8xbf16>, vector<8x8xbf16>, vector<8x8xf32> -> vector<8x8xf32>
    %c8_44 = arith.constant 8 : index
    %c8_45 = arith.constant 8 : index
    %145 = vector.load %arg24[%c8_44, %c8_45] : memref<16x32xf32, #tpu.memory_space<vmem>>, vector<8x8xf32>
    tpu.vector_store %arg24[%c8_44, %c8_45], %144 {strides = array<i32>} : memref<16x32xf32, #tpu.memory_space<vmem>>, vector<8x8xf32>,
    %146 = vector.extract_strided_slice %11 {offsets = [8, 16], sizes = [8, 8], strides = [1, 1]} : vector<16x96xf32> to vector<8x8xf32>
    %147 = arith.truncf %146 : vector<8x8xf32> to vector<8x8xbf16>
    %148 = vector.extract_strided_slice %11 {offsets = [8, 48], sizes = [8, 8], strides = [1, 1]} : vector<16x96xf32> to vector<8x8xf32>
    %149 = arith.truncf %148 : vector<8x8xf32> to vector<8x8xbf16>
    %150 = vector.extract_strided_slice %11 {offsets = [8, 80], sizes = [8, 8], strides = [1, 1]} : vector<16x96xf32> to vector<8x8xf32>
    %151 = arith.truncf %150 : vector<8x8xf32> to vector<8x8xbf16>
    "tpu.trace_start"() <{level = 10 : i32, message = "qe,ke->qk"}> : () -> ()
    %cst_46 = arith.constant dense<0.000000e+00> : vector<8x8xf32>
    %152 = tpu.matmul %147, %149, %cst_46 {dimension_numbers = #tpu.dot_dimension_numbers<[1], [1], [0], [0], [0, 0, 1, 0], [], []>} : vector<8x8xbf16>, vector<8x8xbf16>, vector<8x8xf32> -> vector<8x8xf32>
    "tpu.trace_stop"() : () -> ()
    %153 = arith.addf %152, %103 : vector<8x8xf32>
    %cst_47 = arith.constant dense<0xFF800000> : vector<8xf32>
    %154 = vector.multi_reduction <maximumf>, %153, %cst_47 [1] : vector<8x8xf32> to vector<8xf32>
    %155 = vector.shape_cast %154 : vector<8xf32> to vector<8x1xf32>
    %156 = vector.broadcast %155 : vector<8x1xf32> to vector<8x8xf32>
    %157 = arith.subf %153, %156 : vector<8x8xf32>
    %158 = math.exp %157 : vector<8x8xf32>
    %cst_48 = arith.constant dense<0.000000e+00> : vector<8xf32>
    %159 = vector.multi_reduction <add>, %158, %cst_48 [1] : vector<8x8xf32> to vector<8xf32>
    %160 = vector.shape_cast %159 : vector<8xf32> to vector<8x1xf32>
    %161 = tpu.reciprocal %160 {approx = true} : vector<8x1xf32> -> vector<8x1xf32>
    %162 = vector.broadcast %161 : vector<8x1xf32> to vector<8x8xf32>
    %163 = arith.mulf %158, %162 : vector<8x8xf32>
    %164 = arith.truncf %163 : vector<8x8xf32> to vector<8x8xbf16>
    %cst_49 = arith.constant dense<0.000000e+00> : vector<8x8xf32>
    %165 = tpu.matmul %164, %151, %cst_49 {dimension_numbers = #tpu.dot_dimension_numbers<[1], [0], [0], [1], [0, 0, 1, 1], [], []>} : vector<8x8xbf16>, vector<8x8xbf16>, vector<8x8xf32> -> vector<8x8xf32>
    %c8_50 = arith.constant 8 : index
    %c16_51 = arith.constant 16 : index
    %166 = vector.load %arg24[%c8_50, %c16_51] : memref<16x32xf32, #tpu.memory_space<vmem>>, vector<8x8xf32>
    tpu.vector_store %arg24[%c8_50, %c16_51], %165 {strides = array<i32>} : memref<16x32xf32, #tpu.memory_space<vmem>>, vector<8x8xf32>,
    %167 = vector.extract_strided_slice %11 {offsets = [8, 24], sizes = [8, 8], strides = [1, 1]} : vector<16x96xf32> to vector<8x8xf32>
    %168 = arith.truncf %167 : vector<8x8xf32> to vector<8x8xbf16>
    %169 = vector.extract_strided_slice %11 {offsets = [8, 56], sizes = [8, 8], strides = [1, 1]} : vector<16x96xf32> to vector<8x8xf32>
    %170 = arith.truncf %169 : vector<8x8xf32> to vector<8x8xbf16>
    %171 = vector.extract_strided_slice %11 {offsets = [8, 88], sizes = [8, 8], strides = [1, 1]} : vector<16x96xf32> to vector<8x8xf32>
    %172 = arith.truncf %171 : vector<8x8xf32> to vector<8x8xbf16>
    "tpu.trace_start"() <{level = 10 : i32, message = "qe,ke->qk"}> : () -> ()
    %cst_52 = arith.constant dense<0.000000e+00> : vector<8x8xf32>
    %173 = tpu.matmul %168, %170, %cst_52 {dimension_numbers = #tpu.dot_dimension_numbers<[1], [1], [0], [0], [0, 0, 1, 0], [], []>} : vector<8x8xbf16>, vector<8x8xbf16>, vector<8x8xf32> -> vector<8x8xf32>
    "tpu.trace_stop"() : () -> ()
    %174 = arith.addf %173, %103 : vector<8x8xf32>
    %cst_53 = arith.constant dense<0xFF800000> : vector<8xf32>
    %175 = vector.multi_reduction <maximumf>, %174, %cst_53 [1] : vector<8x8xf32> to vector<8xf32>
    %176 = vector.shape_cast %175 : vector<8xf32> to vector<8x1xf32>
    %177 = vector.broadcast %176 : vector<8x1xf32> to vector<8x8xf32>
    %178 = arith.subf %174, %177 : vector<8x8xf32>
    %179 = math.exp %178 : vector<8x8xf32>
    %cst_54 = arith.constant dense<0.000000e+00> : vector<8xf32>
    %180 = vector.multi_reduction <add>, %179, %cst_54 [1] : vector<8x8xf32> to vector<8xf32>
    %181 = vector.shape_cast %180 : vector<8xf32> to vector<8x1xf32>
    %182 = tpu.reciprocal %181 {approx = true} : vector<8x1xf32> -> vector<8x1xf32>
    %183 = vector.broadcast %182 : vector<8x1xf32> to vector<8x8xf32>
    %184 = arith.mulf %179, %183 : vector<8x8xf32>
    %185 = arith.truncf %184 : vector<8x8xf32> to vector<8x8xbf16>
    %cst_55 = arith.constant dense<0.000000e+00> : vector<8x8xf32>
    %186 = tpu.matmul %185, %172, %cst_55 {dimension_numbers = #tpu.dot_dimension_numbers<[1], [0], [0], [1], [0, 0, 1, 1], [], []>} : vector<8x8xbf16>, vector<8x8xbf16>, vector<8x8xf32> -> vector<8x8xf32>
    %c8_56 = arith.constant 8 : index
    %c24_57 = arith.constant 24 : index
    %187 = vector.load %arg24[%c8_56, %c24_57] : memref<16x32xf32, #tpu.memory_space<vmem>>, vector<8x8xf32>
    tpu.vector_store %arg24[%c8_56, %c24_57], %186 {strides = array<i32>} : memref<16x32xf32, #tpu.memory_space<vmem>>, vector<8x8xf32>,
    %c0_58 = arith.constant 0 : index
    %c0_59 = arith.constant 0 : index
    %188 = vector.load %arg24[%c0_58, %c0_59] : memref<16x32xf32, #tpu.memory_space<vmem>>, vector<16x32xf32>
    %189 = arith.truncf %188 : vector<16x32xf32> to vector<16x32xbf16>
    %c0_60 = arith.constant 0 : index
    %c0_61 = arith.constant 0 : index
    %c0_62 = arith.constant 0 : index
    %190 = vector.load %arg9[%c0_60, %c0_61, %c0_62] : memref<1x32x32xbf16, #tpu.memory_space<vmem>>, vector<1x32x32xbf16>
    %191 = vector.shape_cast %190 : vector<1x32x32xbf16> to vector<32x32xbf16>
    %cst_63 = arith.constant dense<0.000000e+00> : vector<16x32xf32>
    %192 = tpu.matmul %189, %191, %cst_63 {dimension_numbers = #tpu.dot_dimension_numbers<[1], [0], [0], [1], [0, 0, 1, 1], [], []>} : vector<16x32xbf16>, vector<32x32xbf16>, vector<16x32xf32> -> vector<16x32xf32>
    %c0_64 = arith.constant 0 : index
    %c0_65 = arith.constant 0 : index
    %c0_66 = arith.constant 0 : index
    %193 = vector.load %arg10[%c0_64, %c0_65, %c0_66] : memref<1x1x32xf32, #tpu.memory_space<vmem>>, vector<1x1x32xf32>
    %194 = vector.shape_cast %193 : vector<1x1x32xf32> to vector<1x32xf32>
    %195 = vector.broadcast %194 : vector<1x32xf32> to vector<16x32xf32>
    %196 = arith.addf %192, %195 : vector<16x32xf32>
    %197 = arith.addf %3, %196 : vector<16x32xf32>
    %c0_67 = arith.constant 0 : index
    %c0_68 = arith.constant 0 : index
    %c0_69 = arith.constant 0 : index
    %198 = vector.load %arg11[%c0_67, %c0_68, %c0_69] : memref<1x1x32xf32, #tpu.memory_space<vmem>>, vector<1x1x32xf32>
    %199 = vector.shape_cast %198 : vector<1x1x32xf32> to vector<1x32xf32>
    %c0_70 = arith.constant 0 : index
    %c0_71 = arith.constant 0 : index
    %c0_72 = arith.constant 0 : index
    %200 = vector.load %arg12[%c0_70, %c0_71, %c0_72] : memref<1x1x32xf32, #tpu.memory_space<vmem>>, vector<1x1x32xf32>
    %201 = vector.shape_cast %200 : vector<1x1x32xf32> to vector<1x32xf32>
    %cst_73 = arith.constant dense<0.000000e+00> : vector<16xf32>
    %202 = vector.multi_reduction <add>, %197, %cst_73 [1] : vector<16x32xf32> to vector<16xf32>
    %203 = vector.shape_cast %202 : vector<16xf32> to vector<16x1xf32>
    %cst_74 = arith.constant 3.200000e+01 : f32
    %204 = vector.broadcast %cst_74 : f32 to vector<16x1xf32>
    %205 = arith.divf %203, %204 : vector<16x1xf32>
    %206 = arith.mulf %197, %197 : vector<16x32xf32>
    %cst_75 = arith.constant dense<0.000000e+00> : vector<16xf32>
    %207 = vector.multi_reduction <add>, %206, %cst_75 [1] : vector<16x32xf32> to vector<16xf32>
    %208 = vector.shape_cast %207 : vector<16xf32> to vector<16x1xf32>
    %cst_76 = arith.constant 3.200000e+01 : f32
    %209 = vector.broadcast %cst_76 : f32 to vector<16x1xf32>
    %210 = arith.divf %208, %209 : vector<16x1xf32>
    %211 = arith.mulf %205, %205 : vector<16x1xf32>
    %212 = arith.subf %210, %211 : vector<16x1xf32>
    %cst_77 = arith.constant 9.99999974E-6 : f32
    %213 = vector.broadcast %cst_77 : f32 to vector<16x1xf32>
    %214 = arith.addf %212, %213 : vector<16x1xf32>
    %215 = math.rsqrt %214 : vector<16x1xf32>
    %216 = vector.broadcast %215 : vector<16x1xf32> to vector<16x32xf32>
    %217 = vector.broadcast %199 : vector<1x32xf32> to vector<16x32xf32>
    %218 = arith.mulf %216, %217 : vector<16x32xf32>
    %219 = vector.broadcast %205 : vector<16x1xf32> to vector<16x32xf32>
    %220 = arith.subf %197, %219 : vector<16x32xf32>
    %221 = arith.mulf %220, %218 : vector<16x32xf32>
    %222 = vector.broadcast %201 : vector<1x32xf32> to vector<16x32xf32>
    %223 = arith.addf %221, %222 : vector<16x32xf32>
    %224 = arith.truncf %223 : vector<16x32xf32> to vector<16x32xbf16>
    %c0_78 = arith.constant 0 : index
    %c0_79 = arith.constant 0 : index
    %c0_80 = arith.constant 0 : index
    %225 = vector.load %arg13[%c0_78, %c0_79, %c0_80] : memref<1x32x64xbf16, #tpu.memory_space<vmem>>, vector<1x32x64xbf16>
    %226 = vector.shape_cast %225 : vector<1x32x64xbf16> to vector<32x64xbf16>
    %cst_81 = arith.constant dense<0.000000e+00> : vector<16x64xf32>
    %227 = tpu.matmul %224, %226, %cst_81 {dimension_numbers = #tpu.dot_dimension_numbers<[1], [0], [0], [1], [0, 0, 1, 1], [], []>} : vector<16x32xbf16>, vector<32x64xbf16>, vector<16x64xf32> -> vector<16x64xf32>
    %c0_82 = arith.constant 0 : index
    %c0_83 = arith.constant 0 : index
    %c0_84 = arith.constant 0 : index
    %228 = vector.load %arg14[%c0_82, %c0_83, %c0_84] : memref<1x1x64xf32, #tpu.memory_space<vmem>>, vector<1x1x64xf32>
    %229 = vector.shape_cast %228 : vector<1x1x64xf32> to vector<1x64xf32>
    %230 = vector.broadcast %229 : vector<1x64xf32> to vector<16x64xf32>
    %231 = arith.addf %227, %230 : vector<16x64xf32>
    %cst_85 = arith.constant 0.000000e+00 : f32
    %232 = vector.broadcast %cst_85 : f32 to vector<16x64xf32>
    %233 = arith.maximumf %231, %232 : vector<16x64xf32>
    %234 = arith.truncf %233 : vector<16x64xf32> to vector<16x64xbf16>
    %c0_86 = arith.constant 0 : index
    %c0_87 = arith.constant 0 : index
    %c0_88 = arith.constant 0 : index
    %235 = vector.load %arg15[%c0_86, %c0_87, %c0_88] : memref<1x64x32xbf16, #tpu.memory_space<vmem>>, vector<1x64x32xbf16>
    %236 = vector.shape_cast %235 : vector<1x64x32xbf16> to vector<64x32xbf16>
    %cst_89 = arith.constant dense<0.000000e+00> : vector<16x32xf32>
    %237 = tpu.matmul %234, %236, %cst_89 {dimension_numbers = #tpu.dot_dimension_numbers<[1], [0], [0], [1], [0, 0, 1, 1], [], []>} : vector<16x64xbf16>, vector<64x32xbf16>, vector<16x32xf32> -> vector<16x32xf32>
    %c0_90 = arith.constant 0 : index
    %c0_91 = arith.constant 0 : index
    %c0_92 = arith.constant 0 : index
    %238 = vector.load %arg16[%c0_90, %c0_91, %c0_92] : memref<1x1x32xf32, #tpu.memory_space<vmem>>, vector<1x1x32xf32>
    %239 = vector.shape_cast %238 : vector<1x1x32xf32> to vector<1x32xf32>
    %240 = vector.broadcast %239 : vector<1x32xf32> to vector<16x32xf32>
    %241 = arith.addf %237, %240 : vector<16x32xf32>
    %242 = arith.addf %223, %241 : vector<16x32xf32>
    %c0_93 = arith.constant 0 : index
    %c0_94 = arith.constant 0 : index
    %c0_95 = arith.constant 0 : index
    %243 = vector.load %arg17[%c0_93, %c0_94, %c0_95] : memref<1x1x32xf32, #tpu.memory_space<vmem>>, vector<1x1x32xf32>
    %244 = vector.shape_cast %243 : vector<1x1x32xf32> to vector<1x32xf32>
    %c0_96 = arith.constant 0 : index
    %c0_97 = arith.constant 0 : index
    %c0_98 = arith.constant 0 : index
    %245 = vector.load %arg18[%c0_96, %c0_97, %c0_98] : memref<1x1x32xf32, #tpu.memory_space<vmem>>, vector<1x1x32xf32>
    %246 = vector.shape_cast %245 : vector<1x1x32xf32> to vector<1x32xf32>
    %cst_99 = arith.constant dense<0.000000e+00> : vector<16xf32>
    %247 = vector.multi_reduction <add>, %242, %cst_99 [1] : vector<16x32xf32> to vector<16xf32>
    %248 = vector.shape_cast %247 : vector<16xf32> to vector<16x1xf32>
    %cst_100 = arith.constant 3.200000e+01 : f32
    %249 = vector.broadcast %cst_100 : f32 to vector<16x1xf32>
    %250 = arith.divf %248, %249 : vector<16x1xf32>
    %251 = arith.mulf %242, %242 : vector<16x32xf32>
    %cst_101 = arith.constant dense<0.000000e+00> : vector<16xf32>
    %252 = vector.multi_reduction <add>, %251, %cst_101 [1] : vector<16x32xf32> to vector<16xf32>
    %253 = vector.shape_cast %252 : vector<16xf32> to vector<16x1xf32>
    %cst_102 = arith.constant 3.200000e+01 : f32
    %254 = vector.broadcast %cst_102 : f32 to vector<16x1xf32>
    %255 = arith.divf %253, %254 : vector<16x1xf32>
    %256 = arith.mulf %250, %250 : vector<16x1xf32>
    %257 = arith.subf %255, %256 : vector<16x1xf32>
    %cst_103 = arith.constant 9.99999974E-6 : f32
    %258 = vector.broadcast %cst_103 : f32 to vector<16x1xf32>
    %259 = arith.addf %257, %258 : vector<16x1xf32>
    %260 = math.rsqrt %259 : vector<16x1xf32>
    %261 = vector.broadcast %260 : vector<16x1xf32> to vector<16x32xf32>
    %262 = vector.broadcast %244 : vector<1x32xf32> to vector<16x32xf32>
    %263 = arith.mulf %261, %262 : vector<16x32xf32>
    %264 = vector.broadcast %250 : vector<16x1xf32> to vector<16x32xf32>
    %265 = arith.subf %242, %264 : vector<16x32xf32>
    %266 = arith.mulf %265, %263 : vector<16x32xf32>
    %267 = vector.broadcast %246 : vector<1x32xf32> to vector<16x32xf32>
    %268 = arith.addf %266, %267 : vector<16x32xf32>
    %c0_104 = arith.constant 0 : index
    %c0_105 = arith.constant 0 : index
    %269 = vector.load %arg23[%c0_104, %c0_105] : memref<16x32xf32, #tpu.memory_space<vmem>>, vector<16x32xf32>
    tpu.vector_store %arg23[%c0_104, %c0_105], %268 {strides = array<i32>} : memref<16x32xf32, #tpu.memory_space<vmem>>, vector<16x32xf32>,
    %c1_i32 = arith.constant 1 : i32
    %270 = arith.cmpi eq, %arg1, %c1_i32 : i32
    %271 = arith.extui %270 : i1 to i32
    %c0_i32_106 = arith.constant 0 : i32
    %272 = arith.cmpi ne, %271, %c0_i32_106 : i32
    scf.if %272 {
      %cst_107 = arith.constant 0.707106769 : f32
      %273 = vector.broadcast %cst_107 : f32 to vector<16x32xf32>
      %274 = arith.mulf %268, %273 : vector<16x32xf32>
      %275 = math.absf %274 : vector<16x32xf32>
      %cst_108 = arith.constant 0.327591091 : f32
      %276 = vector.broadcast %cst_108 : f32 to vector<16x32xf32>
      %277 = arith.mulf %276, %275 : vector<16x32xf32>
      %cst_109 = arith.constant 1.000000e+00 : f32
      %278 = vector.broadcast %cst_109 : f32 to vector<16x32xf32>
      %279 = arith.addf %278, %277 : vector<16x32xf32>
      %280 = tpu.reciprocal %279 {approx = true} : vector<16x32xf32> -> vector<16x32xf32>
      %281 = arith.mulf %279, %280 : vector<16x32xf32>
      %cst_110 = arith.constant 2.000000e+00 : f32
      %282 = vector.broadcast %cst_110 : f32 to vector<16x32xf32>
      %283 = arith.subf %282, %281 : vector<16x32xf32>
      %284 = arith.mulf %280, %283 : vector<16x32xf32>
      %cst_111 = arith.constant 1.06140542 : f32
      %285 = vector.broadcast %cst_111 : f32 to vector<16x32xf32>
      %286 = arith.mulf %284, %285 : vector<16x32xf32>
      %cst_112 = arith.constant -1.45315206 : f32
      %287 = vector.broadcast %cst_112 : f32 to vector<16x32xf32>
      %288 = arith.addf %287, %286 : vector<16x32xf32>
      %289 = arith.mulf %284, %288 : vector<16x32xf32>
      %cst_113 = arith.constant 1.42141378 : f32
      %290 = vector.broadcast %cst_113 : f32 to vector<16x32xf32>
      %291 = arith.addf %290, %289 : vector<16x32xf32>
      %292 = arith.mulf %284, %291 : vector<16x32xf32>
      %cst_114 = arith.constant -0.284496725 : f32
      %293 = vector.broadcast %cst_114 : f32 to vector<16x32xf32>
      %294 = arith.addf %293, %292 : vector<16x32xf32>
      %295 = arith.mulf %284, %294 : vector<16x32xf32>
      %cst_115 = arith.constant 0.254829586 : f32
      %296 = vector.broadcast %cst_115 : f32 to vector<16x32xf32>
      %297 = arith.addf %296, %295 : vector<16x32xf32>
      %298 = arith.mulf %284, %297 : vector<16x32xf32>
      %299 = arith.mulf %275, %275 : vector<16x32xf32>
      %cst_116 = arith.constant 0.000000e+00 : f32
      %300 = vector.broadcast %cst_116 : f32 to vector<16x32xf32>
      %301 = arith.subf %300, %299 : vector<16x32xf32>
      %302 = math.exp %301 : vector<16x32xf32>
      %303 = arith.mulf %298, %302 : vector<16x32xf32>
      %cst_117 = arith.constant 1.000000e+00 : f32
      %304 = vector.broadcast %cst_117 : f32 to vector<16x32xf32>
      %305 = arith.subf %304, %303 : vector<16x32xf32>
      %cst_118 = arith.constant 0.000000e+00 : f32
      %306 = vector.broadcast %cst_118 : f32 to vector<16x32xf32>
      %307 = arith.cmpf oge, %274, %306 : vector<16x32xf32>
      %cst_119 = arith.constant 0.000000e+00 : f32
      %308 = vector.broadcast %cst_119 : f32 to vector<16x32xf32>
      %309 = arith.subf %308, %305 : vector<16x32xf32>
      %310 = arith.select %307, %305, %309 : vector<16x32xi1>, vector<16x32xf32>
      %cst_120 = arith.constant 5.000000e-01 : f32
      %311 = vector.broadcast %cst_120 : f32 to vector<16x32xf32>
      %312 = arith.mulf %311, %268 : vector<16x32xf32>
      %cst_121 = arith.constant 1.000000e+00 : f32
      %313 = vector.broadcast %cst_121 : f32 to vector<16x32xf32>
      %314 = arith.addf %313, %310 : vector<16x32xf32>
      %315 = arith.mulf %312, %314 : vector<16x32xf32>
      %316 = vector.shape_cast %315 : vector<16x32xf32> to vector<2x8x32xf32>
      %c0_122 = arith.constant 0 : index
      %c0_123 = arith.constant 0 : index
      %c0_124 = arith.constant 0 : index
      %317 = vector.load %arg22[%c0_122, %c0_123, %c0_124] : memref<2x8x32xf32, #tpu.memory_space<vmem>>, vector<2x8x32xf32>
      tpu.vector_store %arg22[%c0_122, %c0_123, %c0_124], %316 {strides = array<i32>} : memref<2x8x32xf32, #tpu.memory_space<vmem>>, vector<2x8x32xf32>,
      %318 = arith.truncf %315 : vector<16x32xf32> to vector<16x32xbf16>
      %c0_125 = arith.constant 0 : index
      %c0_126 = arith.constant 0 : index
      %319 = vector.load %arg19[%c0_125, %c0_126] : memref<32x128xbf16, #tpu.memory_space<vmem>>, vector<32x128xbf16>
      %cst_127 = arith.constant dense<0.000000e+00> : vector<16x128xf32>
      %320 = tpu.matmul %318, %319, %cst_127 {dimension_numbers = #tpu.dot_dimension_numbers<[1], [0], [0], [1], [0, 0, 1, 1], [], []>} : vector<16x32xbf16>, vector<32x128xbf16>, vector<16x128xf32> -> vector<16x128xf32>
      %c0_128 = arith.constant 0 : index
      %c0_129 = arith.constant 0 : index
      %321 = vector.load %arg20[%c0_128, %c0_129] : memref<1x128xf32, #tpu.memory_space<vmem>>, vector<1x128xf32>
      %322 = vector.broadcast %321 : vector<1x128xf32> to vector<16x128xf32>
      %323 = arith.addf %320, %322 : vector<16x128xf32>
      %324 = vector.shape_cast %323 : vector<16x128xf32> to vector<2x8x128xf32>
      %c0_130 = arith.constant 0 : index
      %c0_131 = arith.constant 0 : index
      %c0_132 = arith.constant 0 : index
      %325 = vector.load %arg21[%c0_130, %c0_131, %c0_132] : memref<2x8x128xf32, #tpu.memory_space<vmem>>, vector<2x8x128xf32>
      tpu.vector_store %arg21[%c0_130, %c0_131, %c0_132], %324 {strides = array<i32>} : memref<2x8x128xf32, #tpu.memory_space<vmem>>, vector<2x8x128xf32>,
    } else {
    }
    return
  }
  func.func @transform_0(%arg0: i32, %arg1: i32) -> (i32, i32, i32) {
    %c0_i32 = arith.constant 0 : i32
    %c0_i32_0 = arith.constant 0 : i32
    %c0_i32_1 = arith.constant 0 : i32
    return %arg0, %c0_i32, %c0_i32_0 : i32, i32, i32
  }
  func.func @transform_1(%arg0: i32, %arg1: i32) -> (i32, i32, i32) {
    %c0_i32 = arith.constant 0 : i32
    %c0_i32_0 = arith.constant 0 : i32
    %c0_i32_1 = arith.constant 0 : i32
    return %arg0, %c0_i32, %c0_i32_0 : i32, i32, i32
  }
  func.func @transform_2(%arg0: i32, %arg1: i32) -> (i32, i32) {
    %c0_i32 = arith.constant 0 : i32
    %c0_i32_0 = arith.constant 0 : i32
    %c0_i32_1 = arith.constant 0 : i32
    return %c0_i32, %c0_i32_0 : i32, i32
  }
  func.func @transform_3(%arg0: i32, %arg1: i32) -> (i32, i32) {
    %c0_i32 = arith.constant 0 : i32
    %c0_i32_0 = arith.constant 0 : i32
    %c0_i32_1 = arith.constant 0 : i32
    return %c0_i32, %c0_i32_0 : i32, i32
  }
  func.func @transform_4(%arg0: i32, %arg1: i32) -> (i32, i32) {
    %c0_i32 = arith.constant 0 : i32
    %c0_i32_0 = arith.constant 0 : i32
    %c0_i32_1 = arith.constant 0 : i32
    return %c0_i32, %c0_i32_0 : i32, i32
  }
  func.func @transform_5(%arg0: i32, %arg1: i32) -> (i32, i32, i32) {
    %c0_i32 = arith.constant 0 : i32
    %c0_i32_0 = arith.constant 0 : i32
    %c0_i32_1 = arith.constant 0 : i32
    return %arg1, %c0_i32, %c0_i32_0 : i32, i32, i32
  }
  func.func @transform_6(%arg0: i32, %arg1: i32) -> (i32, i32, i32) {
    %c0_i32 = arith.constant 0 : i32
    %c0_i32_0 = arith.constant 0 : i32
    %c0_i32_1 = arith.constant 0 : i32
    return %arg1, %c0_i32, %c0_i32_0 : i32, i32, i32
  }
  func.func @transform_7(%arg0: i32, %arg1: i32) -> (i32, i32, i32) {
    %c0_i32 = arith.constant 0 : i32
    %c0_i32_0 = arith.constant 0 : i32
    %c0_i32_1 = arith.constant 0 : i32
    return %arg1, %c0_i32, %c0_i32_0 : i32, i32, i32
  }
  func.func @transform_8(%arg0: i32, %arg1: i32) -> (i32, i32, i32) {
    %c0_i32 = arith.constant 0 : i32
    %c0_i32_0 = arith.constant 0 : i32
    %c0_i32_1 = arith.constant 0 : i32
    return %arg1, %c0_i32, %c0_i32_0 : i32, i32, i32
  }
  func.func @transform_9(%arg0: i32, %arg1: i32) -> (i32, i32, i32) {
    %c0_i32 = arith.constant 0 : i32
    %c0_i32_0 = arith.constant 0 : i32
    %c0_i32_1 = arith.constant 0 : i32
    return %arg1, %c0_i32, %c0_i32_0 : i32, i32, i32
  }
  func.func @transform_10(%arg0: i32, %arg1: i32) -> (i32, i32, i32) {
    %c0_i32 = arith.constant 0 : i32
    %c0_i32_0 = arith.constant 0 : i32
    %c0_i32_1 = arith.constant 0 : i32
    return %arg1, %c0_i32, %c0_i32_0 : i32, i32, i32
  }
  func.func @transform_11(%arg0: i32, %arg1: i32) -> (i32, i32, i32) {
    %c0_i32 = arith.constant 0 : i32
    %c0_i32_0 = arith.constant 0 : i32
    %c0_i32_1 = arith.constant 0 : i32
    return %arg1, %c0_i32, %c0_i32_0 : i32, i32, i32
  }
  func.func @transform_12(%arg0: i32, %arg1: i32) -> (i32, i32, i32) {
    %c0_i32 = arith.constant 0 : i32
    %c0_i32_0 = arith.constant 0 : i32
    %c0_i32_1 = arith.constant 0 : i32
    return %arg1, %c0_i32, %c0_i32_0 : i32, i32, i32
  }
  func.func @transform_13(%arg0: i32, %arg1: i32) -> (i32, i32, i32) {
    %c0_i32 = arith.constant 0 : i32
    %c0_i32_0 = arith.constant 0 : i32
    %c0_i32_1 = arith.constant 0 : i32
    return %arg1, %c0_i32, %c0_i32_0 : i32, i32, i32
  }
  func.func @transform_14(%arg0: i32, %arg1: i32) -> (i32, i32, i32) {
    %c0_i32 = arith.constant 0 : i32
    %c0_i32_0 = arith.constant 0 : i32
    %c0_i32_1 = arith.constant 0 : i32
    return %arg1, %c0_i32, %c0_i32_0 : i32, i32, i32
  }
  func.func @transform_15(%arg0: i32, %arg1: i32) -> (i32, i32, i32) {
    %c0_i32 = arith.constant 0 : i32
    %c0_i32_0 = arith.constant 0 : i32
    %c0_i32_1 = arith.constant 0 : i32
    return %arg1, %c0_i32, %c0_i32_0 : i32, i32, i32
  }
  func.func @transform_16(%arg0: i32, %arg1: i32) -> (i32, i32, i32) {
    %c0_i32 = arith.constant 0 : i32
    %c0_i32_0 = arith.constant 0 : i32
    %c0_i32_1 = arith.constant 0 : i32
    return %arg1, %c0_i32, %c0_i32_0 : i32, i32, i32
  }
  func.func @transform_17(%arg0: i32, %arg1: i32) -> (i32, i32) {
    %c0_i32 = arith.constant 0 : i32
    %c0_i32_0 = arith.constant 0 : i32
    %c0_i32_1 = arith.constant 0 : i32
    return %c0_i32, %c0_i32_0 : i32, i32
  }
  func.func @transform_18(%arg0: i32, %arg1: i32) -> (i32, i32) {
    %c0_i32 = arith.constant 0 : i32
    %c0_i32_0 = arith.constant 0 : i32
    %c0_i32_1 = arith.constant 0 : i32
    return %c0_i32, %c0_i32_0 : i32, i32
  }
  func.func @transform_19(%arg0: i32, %arg1: i32) -> (i32, i32, i32) {
    %c0_i32 = arith.constant 0 : i32
    %c0_i32_0 = arith.constant 0 : i32
    %c0_i32_1 = arith.constant 0 : i32
    return %arg0, %c0_i32, %c0_i32_0 : i32, i32, i32
  }
  func.func @transform_20(%arg0: i32, %arg1: i32) -> (i32, i32, i32) {
    %c0_i32 = arith.constant 0 : i32
    %c0_i32_0 = arith.constant 0 : i32
    %c0_i32_1 = arith.constant 0 : i32
    return %arg0, %c0_i32, %c0_i32_0 : i32, i32, i32
  }
}

</mosaic_0001>

<bundles_post_ra>
// kernel: transformer_encoder_forward.1
= control target key start
LH: loop header
LB: loop body
LE: loop exit
PB: predicated region body
PF: predicated region fallthrough
CT: control target
= control target key end

     0   :  { %s3631_s0 = inlined_call_operand.vmem [shape: f32[2,8,4], index: 0, kind: input, shape index: {}]   ;;  %s3632_s1 = inlined_call_operand.vmem [shape: f32[2,1,8], index: 1, kind: input, shape index: {}]   ;;  %s3633_s2 = inlined_call_operand.vmem [shape: f32[16,32], index: 2, kind: input, shape index: {}]   ;;  %s3634_s3 = inlined_call_operand.vmem [shape: bf16[4,32], index: 3, kind: input, shape index: {}]   ;;  %s3635_s4 = inlined_call_operand.vmem [shape: f32[1,32], index: 4, kind: input, shape index: {}]   ;;  %s3636_s5 = inlined_call_operand.vmem [shape: bf16[2,32,96], index: 5, kind: input, shape index: {}]   ;;  %s3637_s6 = inlined_call_operand.vmem [shape: f32[2,1,96], index: 6, kind: input, shape index: {}]   ;;  %s3638_s7 = inlined_call_operand.vmem [shape: bf16[2,32,32], index: 7, kind: input, shape index: {}]   ;;  %s3639_s8 = inlined_call_operand.vmem [shape: f32[2,1,32], index: 8, kind: input, shape index: {}]   ;;  %s3640_s9 = inlined_call_operand.vmem [shape: f32[2,1,32], index: 9, kind: input, shape index: {}]   ;;  %s3641_s10 = inlined_call_operand.vmem [shape: f32[2,1,32], index: 10, kind: input, shape index: {}]   ;;  %s3642_s11 = inlined_call_operand.vmem [shape: bf16[2,32,64], index: 11, kind: input, shape index: {}]   ;;  %s3643_s12 = inlined_call_operand.vmem [shape: f32[2,1,64], index: 12, kind: input, shape index: {}]   ;;  %s3644_s13 = inlined_call_operand.vmem [shape: bf16[2,64,32], index: 13, kind: input, shape index: {}]   ;;  %s3645_s14 = inlined_call_operand.vmem [shape: f32[2,1,32], index: 14, kind: input, shape index: {}]   ;;  %s3646_s15 = inlined_call_operand.vmem [shape: f32[2,1,32], index: 15, kind: input, shape index: {}]   ;;  %s3647_s16 = inlined_call_operand.vmem [shape: f32[2,1,32], index: 16, kind: input, shape index: {}]   ;;  %s3648_s17 = inlined_call_operand.vmem [shape: bf16[32,128], index: 17, kind: input, shape index: {}]   ;;  %s3649_s18 = inlined_call_operand.vmem [shape: f32[1,128], index: 18, kind: input, shape index: {}]   ;;  %s3650_s19 = inlined_call_operand.vmem [shape: f32[2,8,128], index: 19, kind: output, shape index: {0}]   ;;  %s3651_s20 = inlined_call_operand.hbm [shape: f32[2,8,32], index: 20, kind: output, shape index: {1}]  }
   0x1   :  { %3660 = sst [smem:[#allocation10_spill]] %s3631_s0 }
   0x2   :  { %3661 = sst [smem:[#allocation11_spill]] %s3632_s1 }
   0x3   :  { %3662 = sst [smem:[#allocation12_spill]] %s3633_s2 }
   0x4   :  { %3663 = sst [smem:[#allocation13_spill]] %s3634_s3 }
   0x5   :  { %3664 = sst [smem:[#allocation14_spill]] %s3635_s4 }
   0x6   :  { %3665 = sst [smem:[#allocation15_spill]] %s3636_s5 }
   0x7   :  { %3666 = sst [smem:[#allocation16_spill]] %s3638_s7 }
   0x8   :  { %3667 = sst [smem:[#allocation17_spill]] %s3648_s17 }
   0x9   :  { %3668 = sst [smem:[#allocation18_spill]] %s3649_s18 }
   0xa   :  { %3669 = sst [smem:[#allocation19_spill]] %s3650_s19 }
   0xb   :  { %3670 = sst [smem:[#allocation20_spill]] %s3651_s20 }
   0xc   :  { %26 = vsyncpa [#allocation5], 0  ;;  %s3191_s1 = smov 0   ;;  %s3193_s22 = smov 0  }
   0xd   :  { %s3195_s23 = smov 0  }
   0xe LB: > { %3671 = sst [smem:[#allocation7_spill]] %s3058_s22  ;;  %s41_s2 = sadd.s32 1, %s3058_s22  ;;  %s3062_s23 = sphi %s3195_s23, %s32_s23   ;;  %s3058_s22 = sphi %s3193_s22, %s3696_s22   ;;  %s3054_s1 = sphi %s3191_s1, %s3695_s1  }
   0xf   : > { %3672 = sst [smem:[#allocation8_spill]] %s3062_s23  ;;  %p42_p0 = scmp.ge.s32.totalorder %s41_s2, 2 }
  0x10   : > { %p2633_p1 = scmp.ge.s32.totalorder %s3062_s23, 1  ;;  %p693_p2 = scmp.lt.s32.totalorder %s3062_s23, 3 }
  0x11   : > { %s3698_s2 = smov (%p42_p0, %s41_s2), 0 }
  0x12   : > { %3673 = sst [smem:[#allocation9_spill]] %s3698_s2  ;;  %p694_p3 = pnand %p2633_p1, %p693_p2 }
  0x13   : > { %p810_p4 = scmp.lt.s32.totalorder (!%p694_p3), %s3054_s1, 1  ;;  %s3674_s5 = sld [smem:[#allocation15_spill]] (!%p694_p3) }
  0x14   : > { %697 = sbr.rel (%p694_p3) target bundleno = 2898 (0xb52), region = 96  ;;  %s3675_s7 = sld [smem:[#allocation16_spill]] (!%p694_p3) }
  0x15   : > { %p2642_p5 = scmp.ne.s32.totalorder (!%p694_p3), %s3054_s1, 0 }
  0x1b   : > { %s3214_s25 = scalar_select %p810_p4, %s3054_s1, 1 }
  0x1c   : > { %865 = sbr.rel (%p2642_p5) target bundleno = 264 (0x108), region = 100  ;;  %s3676_s22 = sld [smem:[#allocation13_spill]] (!%p2642_p5)  ;;  %vm881_vm0 = vcmask (!%p2642_p5), 1041408   ;;  %v3064_v2 = vmov (!%p2642_p5), 0.0   ;;  %vm3065_vm1 = vmmov (!%p2642_p5), 0   ;;  %vm877_vm2 = vcmask (!%p2642_p5), 31744  }
  0x1d   : > { %s2697_s3 = sshll.u32 %s3214_s25, 4  ;;  %s2700_s17 = sshll.u32 %s3214_s25, 5  ;;  %2752 = vmatprep.subr.bf16.mxu0 (!%p2642_p5), %v3064_v2  ;;  %2754 = vmatprep.mubr.msk.bf16.mxu0 (!%p2642_p5), %vm3065_vm1, %v3064_v2  ;;  %vm932_vm3 = vcmask (!%p2642_p5), 261120  }
  0x1e   : > { %s3224_s30 = scalar_lea.vmem %s3674_s5, %s2697_s3  ;;  %s3229_s24 = scalar_lea.vmem %s3675_s7, %s2697_s3 }
  0x1f   : > { %s3246_s5 = scalar_lea.vmem %s3642_s11, %s2697_s3  ;;  %s839_s7 = scalar_lea.vmem %s3643_s12, %s3214_s25 }
  0x20   : > { %s3256_s20 = scalar_lea.vmem %s3644_s13, %s2700_s17  ;;  %s847_s26 = scalar_lea.vmem %s3645_s14, %s3214_s25 }
  0x21   : > { %s850_s4 = scalar_lea.vmem %s3646_s15, %s3214_s25  ;;  %s853_s18 = scalar_lea.vmem %s3647_s16, %s3214_s25 }
  0x22   : > { %v869_v0 = vld [vmem:[%s3676_s22] sm:$0x3] (!%p2642_p5)  ;;  %s3677_s19 = sld [smem:[#allocation10_spill]] (!%p2642_p5)  ;;  %s3678_s29 = sld [smem:[#allocation14_spill]] (!%p2642_p5) }
  0x23   : > { %v883_v3 = vsel %vm881_vm0, %v869_v0, 0  ;;  %s3679_s22 = sld [smem:[#allocation12_spill]] }
  0x24   : > { %2753 = vmatpush3.bf16.msra.mxu0 %v883_v3 }
  0x28   : > { %v866_v1 = vld [vmem:[%s3677_s19] sm:$0xff]  ;;  %v867_v4 = vld [vmem:[%s3677_s19 + $0x8] sm:$0xff] }
  0x29   : > { %v868_v5 = vpack.c.bf16 %v867_v4, %v866_v1  ;;  %v2643_v6 = vld [vmem:[%s3678_s29] ss:$0 sm:$0xff]  ;;  %s3680_s17 = smov %s3679_s22 }
  0x2a   : > { %v928_v10 = vld [vmem:[%s3679_s22] sm:$0xff]  ;;  %v929_v15 = vld [vmem:[%s3680_s17 + $0x8] sm:$0xff] }
  0x2b   : > { %2755 = vmatmul.mubr.msk.bf16.vlgmr.msra.gmra.mrb[0].mxu0 %vm877_vm2, %v868_v5 }
  0xfe   : > { %v919_v7 = vpop.f32.mrb[0].mxu0 }
  0xff   : > { %v920_v8 = vadd.f32 %v2643_v6, %v919_v7  ;;  %v2756_v9 = vpop.f32.mrb[1].mxu0 }
 0x100   : > { %v922_v11 = vpop.f32.mrb[2].mxu0 }
 0x101   : > { %v926_v12 = vmul.f32 5.656854, %v920_v8  ;;  %v923_v13 = vadd.f32 %v2643_v6, %v922_v11  ;;  %v2757_v14 = vpop.f32.mrb[3].mxu0 }
 0x103   : > { %v930_v16 = vadd.f32 %v928_v10, %v926_v12  ;;  %v927_v17 = vmul.f32 5.656854, %v923_v13 }
 0x105   : > { %933 = vst.msk [vmem:[#allocation2] sm:$0xff] %vm932_vm3, %v930_v16  ;;  %v931_v18 = vadd.f32 %v929_v15, %v927_v17 }
 0x107   : > { %934 = vst.msk [vmem:[#allocation2 + $0x8] sm:$0xff] %vm932_vm3, %v931_v18 }
 0x108 PF: > { %v2950_v19 = vld [vmem:[%s3224_s30] sm:$0xff]   ;;  %v3066_v20 = vmov 0.0   ;;  %v2951_v21 = vld [vmem:[%s3224_s30 + $0x8] sm:$0xff]   ;;  %vm3067_vm4 = vmmov 0   ;;  %vm961_vm5 = vcmask 261120   ;;  %s3681_s27 = scalar_lea.vmem %s3637_s6, %s3214_s25  ;;  %s3068_s3 = smov 120  }
 0x109   : > { %2758 = vmatprep.subr.bf16.mxu0 %v3066_v20  ;;  %2766 = vmatprep.subr.bf16.mxu1 %v3066_v20  ;;  %v2645_v25 = vld [vmem:[%s3681_s27] ss:$0 sm:$0xff]  ;;  %s3069_s29 = smov 96   ;;  %s3070_s0 = smov 80   ;;  %vm1017_vm6 = vcmask 64512   ;;  %vm1081_vm7 = vcmask 1043456  }
 0x10a   : > { %2759 = vmatpush3.bf16.msra.mxu0 %v2950_v19  ;;  %2762 = vmatprep.mubr.msk.bf16.mxu0 %vm3067_vm4, %v3066_v20  ;;  %s3071_s21 = smov 88   ;;  %s3072_s22 = smov 72   ;;  %vm1240_vm8 = vcmask 130112   ;;  %vm1356_vm9 = vcmask 195712   ;;  %vm1472_vm10 = vcmask 261312   ;;  %vm2169_vm11 = vcmask 523264  }
 0x10b   : > { %2760 = vmatprep.subr.bf16.mxu0 %v3066_v20  ;;  %2768 = vmatprep.mubr.msk.bf16.mxu1 %vm3067_vm4, %v3066_v20  ;;  %s3073_s2 = smov 112   ;;  %s3074_s28 = smov 104  }
 0x10c   : > { %v3295_v22 = vld [vmem:[#allocation2] sm:$0xff]  ;;  %s3682_s27 = sld [smem:[#allocation11_spill]]  ;;  %s3080_s30 = smov 16  }
 0x10d   : > { %s3081_s23 = smov 24   ;;  %p2686_p6 = scmp.ne.s32.totalorder %s3054_s1, 1 }
 0x10e   : > { %v3297_v23 = vld [vmem:[#allocation2 + $0x8] sm:$0xff]  ;;  %2761 = vmatpush3.bf16.msra.mxu0 %v2951_v21  ;;  %vm3083_vm12 = vmmov (!%p2686_p6), 0  }
 0x10f   : > { %v937_v24 = vpack.c.bf16 %v3297_v23, %v3295_v22  ;;  %2772 = vmatprep.subr.bf16.mxu0 %v3066_v20 }
 0x111   : > { %2763 = vmatmul.mubr.msk.bf16.vlgmr.msra.gmra.mrb[0].mxu0 %vm961_vm5, %v937_v24 }
 0x112   : > { %2774 = vmatprep.mubr.msk.bf16.mxu0 %vm3067_vm4, %v3066_v20  ;;  %v2649_v56 = vld [vmem:[%s3682_s27] ss:$0 sm:$0xff]  ;;  %v2659_v17 = vld [vmem:[%s3682_s27 + $0x1] ss:$0 sm:$0xff] }
 0x1e4   : > { %v999_v26 = vpop.f32.mrb[0].mxu0 }
 0x1e5   : > { %v1000_v27 = vadd.f32 %v2645_v25, %v999_v26  ;;  %v2764_v28 = vpop.f32.mrb[1].mxu0 }
 0x1e6   : > { %v1002_v29 = vpop.f32.mrb[2].mxu0 }
 0x1e7   : > { %v3313_v30 = vpack.c.bf16 %v1000_v27, %v1000_v27  ;;  %v2765_v31 = vpop.f32.mrb[3].mxu0  ;;  %v1003_v32 = vadd.f32 %v2645_v25, %v1002_v29 }
 0x1e9   : > { %1126 = vrot.lane.b32.xlu1 %v3313_v30, %s3068_s3  ;;  %1015 = vrot.lane.b32.xlu0 %v3313_v30, %s3069_s29  ;;  %v3321_v33 = vpack.c.bf16 %v1003_v32, %v1003_v32 }
 0x1ed   : > { %1244 = vrot.lane.b32.xlu1 %v3313_v30, %s3070_s0  ;;  %1128 = vrot.lane.b32.xlu0 %v3313_v30, %s3071_s21 }
 0x1f1   : > { %1360 = vrot.lane.b32.xlu1 %v3313_v30, %s3072_s22  ;;  %1242 = vrot.lane.b32.xlu0 %v3313_v30, %s3073_s2 }
 0x1f5   : > { %1358 = vrot.lane.b32.xlu0 %v3313_v30, %s3074_s28  ;;  %1484 = vrot.lane.b32.xlu1 %v3321_v33, %s3069_s29  ;;  %s3683_s29 = scalar_lea.vmem %s3639_s8, %s3214_s25 }
 0x1f9   : > { %1595 = vrot.lane.b32.xlu0 %v3321_v33, %s3071_s21  ;;  %1593 = vrot.lane.b32.xlu1 %v3321_v33, %s3068_s3  ;;  %s3076_s21 = smov 64  }
 0x1fd   : > { %1710 = vrot.lane.b32.xlu0 %v3321_v33, %s3070_s0  ;;  %1708 = vrot.lane.b32.xlu1 %v3321_v33, %s3073_s2  ;;  %s3075_s0 = smov 56   ;;  %s3078_s2 = smov 40  }
 0x201   : > { %1825 = vrot.lane.b32.xlu0 %v3321_v33, %s3072_s22  ;;  %1823 = vrot.lane.b32.xlu1 %v3321_v33, %s3074_s28  ;;  %s3077_s22 = smov 48   ;;  %s3079_s28 = smov 8  }
 0x25b   : > { %v1016_v34 = vpop.permute.xlu0 %1015  ;;  %v1127_v37 = vpop.permute.xlu1 %1126 }
 0x25c   : > { %v1022_v35 = vsel %vm1017_vm6, %v1016_v34, 0 }
 0x25d   : > { %2767 = vmatpush3.bf16.xpose.msra.mxu1 %v1022_v35 }
 0x25e   : > { %2778 = vmatprep.subr.bf16.mxu1 %v3066_v20 }
 0x25f   : > { %v1129_v36 = vpop.permute.xlu0 %1128  ;;  %v1245_v39 = vpop.permute.xlu1 %1244 }
 0x260   : > { %v1134_v38 = vsel %vm1017_vm6, %v1129_v36, 0  ;;  %v1250_v40 = vsel %vm1017_vm6, %v1245_v39, 0 }
 0x263   : > { %v1361_v41 = vpop.permute.xlu1 %1360  ;;  %v1243_v42 = vpop.permute.xlu0 %1242 }
 0x264   : > { %2769 = vmatmul.mubr.msk.bf16.vlgmr.msra.gmra.mrb[0].mxu1 %vm1017_vm6, %v3313_v30  ;;  %v1366_v43 = vsel %vm1017_vm6, %v1361_v41, 0 }
 0x265   : > { %2779 = vmatpush3.bf16.xpose.msra.mxu1 %v1134_v38  ;;  %2780 = vmatprep.mubr.msk.bf16.mxu1 %vm3067_vm4, %v3066_v20 }
 0x266   : > { %2790 = vmatprep.subr.bf16.mxu1 %v3066_v20 }
 0x267   : > { %v1485_v44 = vpop.permute.xlu1 %1484  ;;  %v1359_v45 = vpop.permute.xlu0 %1358 }
 0x268   : > { %v1490_v46 = vsel %vm1017_vm6, %v1485_v44, 0 }
 0x26b   : > { %v1596_v47 = vpop.permute.xlu0 %1595  ;;  %v1594_v50 = vpop.permute.xlu1 %1593 }
 0x26c   : > { %2781 = vmatmul.mubr.msk.bf16.vlgmr.msra.gmra.mrb[4].mxu1 %vm1017_vm6, %v1127_v37  ;;  %v1601_v48 = vsel %vm1017_vm6, %v1596_v47, 0 }
 0x26d   : > { %2791 = vmatpush3.bf16.xpose.msra.mxu1 %v1250_v40  ;;  %2792 = vmatprep.mubr.msk.bf16.mxu1 %vm3067_vm4, %v3066_v20 }
 0x26e   : > { %2802 = vmatprep.subr.bf16.mxu1 %v3066_v20 }
 0x26f   : > { %v1711_v49 = vpop.permute.xlu0 %1710  ;;  %v1709_v53 = vpop.permute.xlu1 %1708 }
 0x270   : > { %v1716_v51 = vsel %vm1017_vm6, %v1711_v49, 0 }
 0x273   : > { %v1826_v52 = vpop.permute.xlu0 %1825  ;;  %v1824_v55 = vpop.permute.xlu1 %1823 }
 0x274   : > { %2793 = vmatmul.mubr.msk.bf16.vlgmr.msra.gmra.mrb[8].mxu1 %vm1017_vm6, %v1243_v42  ;;  %v1831_v54 = vsel %vm1017_vm6, %v1826_v52, 0 }
 0x275   : > { %2803 = vmatpush3.bf16.xpose.msra.mxu1 %v1366_v43  ;;  %2804 = vmatprep.mubr.msk.bf16.mxu1 %vm3067_vm4, %v3066_v20 }
 0x276   : > { %2814 = vmatprep.subr.bf16.mxu1 %v3066_v20 }
 0x27c   : > { %2805 = vmatmul.mubr.msk.bf16.vlgmr.msra.gmra.mrb[12].mxu1 %vm1017_vm6, %v1359_v45 }
 0x27d   : > { %2815 = vmatpush3.bf16.xpose.msra.mxu1 %v1490_v46  ;;  %2816 = vmatprep.mubr.msk.bf16.mxu1 %vm3067_vm4, %v3066_v20 }
 0x27e   : > { %2826 = vmatprep.subr.bf16.mxu1 %v3066_v20 }
 0x284   : > { %2817 = vmatmul.mubr.msk.bf16.vlgmr.msra.gmra.mrb[16].mxu1 %vm1017_vm6, %v3321_v33 }
 0x285   : > { %2827 = vmatpush3.bf16.xpose.msra.mxu1 %v1601_v48  ;;  %2828 = vmatprep.mubr.msk.bf16.mxu1 %vm3067_vm4, %v3066_v20 }
 0x286   : > { %2838 = vmatprep.subr.bf16.mxu1 %v3066_v20 }
 0x28c   : > { %2829 = vmatmul.mubr.msk.bf16.vlgmr.msra.gmra.mrb[20].mxu1 %vm1017_vm6, %v1594_v50 }
 0x28d   : > { %2839 = vmatpush3.bf16.xpose.msra.mxu1 %v1716_v51  ;;  %2840 = vmatprep.mubr.msk.bf16.mxu1 %vm3067_vm4, %v3066_v20 }
 0x28e   : > { %2850 = vmatprep.subr.bf16.mxu1 %v3066_v20 }
 0x294   : > { %2841 = vmatmul.mubr.msk.bf16.vlgmr.msra.gmra.mrb[24].mxu1 %vm1017_vm6, %v1709_v53 }
 0x295   : > { %2851 = vmatpush3.bf16.xpose.msra.mxu1 %v1831_v54  ;;  %2852 = vmatprep.mubr.msk.bf16.mxu1 %vm3067_vm4, %v3066_v20 }
 0x296   : > { %2862 = vmatprep.subr.bf16.mxu1 %v3066_v20 }
 0x29c   : > { %2853 = vmatmul.mubr.msk.bf16.vlgmr.msra.gmra.mrb[28].mxu1 %vm1017_vm6, %v1824_v55 }
 0x29d   : > { %2866 = vmatprep.mubr.msk.bf16.mxu1 %vm3067_vm4, %v3066_v20 }
 0x337   : > { %v1058_v57 = vpop.f32.mrb[0].mxu1 }
 0x338   : > { %v1059_v58 = vadd.f32 %v2649_v56, %v1058_v57  ;;  %v2770_v59 = vpop.f32.mrb[1].mxu1 }
 0x339   : > { %v1061_v60 = vpop.f32.mrb[2].mxu1 }
 0x33a   : > { %v2771_v61 = vpop.f32.mrb[3].mxu1  ;;  %v1064_v62 = vsel %vm1017_vm6, %v1059_v58, -inf }
 0x33b   : > { %1065 = vmax.xlane.f32.xlu0 %v1064_v62 }
 0x33f   : > { %v1170_v63 = vpop.f32.mrb[4].mxu1 }
 0x340   : > { %v1171_v0 = vadd.f32 %v2649_v56, %v1170_v63  ;;  %v2782_v1 = vpop.f32.mrb[5].mxu1 }
 0x341   : > { %v1173_v2 = vpop.f32.mrb[6].mxu1 }
 0x342   : > { %v2783_v3 = vpop.f32.mrb[7].mxu1  ;;  %v1176_v4 = vsel %vm1017_vm6, %v1171_v0, -inf }
 0x343   : > { %1177 = vmax.xlane.f32.xlu1 %v1176_v4 }
 0x347   : > { %v1286_v5 = vpop.f32.mrb[8].mxu1 }
 0x348   : > { %v1287_v6 = vadd.f32 %v2649_v56, %v1286_v5  ;;  %v2794_v7 = vpop.f32.mrb[9].mxu1 }
 0x349   : > { %v1289_v8 = vpop.f32.mrb[10].mxu1 }
 0x34a   : > { %v2795_v9 = vpop.f32.mrb[11].mxu1  ;;  %v1292_v10 = vsel %vm1017_vm6, %v1287_v6, -inf }
 0x34b   : > { %1293 = vmax.xlane.f32.xlu0 %v1292_v10 }
 0x34f   : > { %v1402_v11 = vpop.f32.mrb[12].mxu1 }
 0x350   : > { %v3379_v12 = vadd.f32 %v2649_v56, %v1402_v11  ;;  %v2806_v13 = vpop.f32.mrb[13].mxu1 }
 0x351   : > { %v1405_v14 = vpop.f32.mrb[14].mxu1 }
 0x352   : > { %v2807_v15 = vpop.f32.mrb[15].mxu1  ;;  %v1408_v16 = vsel %vm1017_vm6, %v3379_v12, -inf }
 0x353   : > { %1409 = vmax.xlane.f32.xlu0 %v1408_v16 }
 0x357   : > { %v1526_v18 = vpop.f32.mrb[16].mxu1 }
 0x358   : > { %v3386_v19 = vadd.f32 %v2659_v17, %v1526_v18  ;;  %v2818_v21 = vpop.f32.mrb[17].mxu1 }
 0x359   : > { %v1529_v24 = vpop.f32.mrb[18].mxu1 }
 0x35a   : > { %v2819_v25 = vpop.f32.mrb[19].mxu1  ;;  %v1532_v26 = vsel %vm1017_vm6, %v3386_v19, -inf }
 0x35b   : > { %1533 = vmax.xlane.f32.xlu1 %v1532_v26 }
 0x35f   : > { %v1637_v27 = vpop.f32.mrb[20].mxu1 }
 0x360   : > { %v3390_v28 = vadd.f32 %v2659_v17, %v1637_v27  ;;  %v2830_v29 = vpop.f32.mrb[21].mxu1 }
 0x361   : > { %v1640_v31 = vpop.f32.mrb[22].mxu1 }
 0x362   : > { %v2831_v32 = vpop.f32.mrb[23].mxu1  ;;  %v1643_v34 = vsel %vm1017_vm6, %v3390_v28, -inf }
 0x363   : > { %1644 = vmax.xlane.f32.xlu0 %v1643_v34 }
 0x367   : > { %v1752_v35 = vpop.f32.mrb[24].mxu1 }
 0x368   : > { %v1753_v36 = vadd.f32 %v2659_v17, %v1752_v35  ;;  %v2842_v37 = vpop.f32.mrb[25].mxu1 }
 0x369   : > { %v1755_v38 = vpop.f32.mrb[26].mxu1 }
 0x36a   : > { %v2843_v39 = vpop.f32.mrb[27].mxu1  ;;  %v1758_v40 = vsel %vm1017_vm6, %v1753_v36, -inf }
 0x36b   : > { %1759 = vmax.xlane.f32.xlu1 %v1758_v40 }
 0x36f   : > { %v1867_v41 = vpop.f32.mrb[28].mxu1 }
 0x370   : > { %v2854_v42 = vpop.f32.mrb[29].mxu1  ;;  %v3399_v45 = vadd.f32 %v2659_v17, %v1867_v41 }
 0x371   : > { %v1870_v43 = vpop.f32.mrb[30].mxu1 }
 0x372   : > { %v2855_v44 = vpop.f32.mrb[31].mxu1  ;;  %v1873_v46 = vsel %vm1017_vm6, %v3399_v45, -inf }
 0x379   : > { %1188 = vrot.lane.b32.xlu0 %v3313_v30, %s3075_s0 }
 0x37c   : > { %1076 = vrot.lane.b32.xlu1 %v3313_v30, %s3076_s21 }
 0x398   : > { %1874 = vmax.xlane.f32.xlu0 %v1873_v46 }
 0x3c8   : > { %v1066_v47 = vpop.xlane.xlu0 %1065 }
 0x3c9   : > { %v1067_v48 = vsub.f32 %v1059_v58, %v1066_v47 }
 0x3cb   : > { %v1068_v49 = vmul.f32 1.442695, %v1067_v48 }
 0x3cd   : > { %2960 = vpow2.f32 %v1068_v49 }
 0x3d0   : > { %v1178_v50 = vpop.xlane.xlu1 %1177 }
 0x3d1   : > { %v1179_v51 = vsub.f32 %v1171_v0, %v1178_v50 }
 0x3d3   : > { %v1180_v52 = vmul.f32 1.442695, %v1179_v51 }
 0x3d5   : > { %2962 = vpow2.f32 %v1180_v52 }
 0x3d7   : > { %v3403_v53 = vpop.eup %2960 }
 0x3d8   : > { %v1294_v54 = vpop.xlane.xlu0 %1293  ;;  %v1070_v55 = vsel %vm1017_vm6, %v3403_v53, 0.0 }
 0x3d9   : > { %v1295_v56 = vsub.f32 %v1287_v6, %v1294_v54  ;;  %1071 = vadd.xlane.f32.xlu1 %v1070_v55 }
 0x3db   : > { %v1296_v57 = vmul.f32 1.442695, %v1295_v56 }
 0x3dd   : > { %2964 = vpow2.f32 %v1296_v57 }
 0x3df   : > { %v3407_v59 = vpop.eup %2962 }
 0x3e0   : > { %v1182_v58 = vsel %vm1017_vm6, %v3407_v59, 0.0  ;;  %v1410_v1 = vpop.xlane.xlu0 %1409 }
 0x3e1   : > { %1183 = vadd.xlane.f32.xlu0 %v1182_v58  ;;  %v1411_v3 = vsub.f32 %v3379_v12, %v1410_v1 }
 0x3e3   : > { %v1412_v4 = vmul.f32 1.442695, %v1411_v3 }
 0x3e5   : > { %2966 = vpow2.f32 %v1412_v4 }
 0x3e7   : > { %v3411_v60 = vpop.eup %2964 }
 0x3e8   : > { %v1298_v61 = vsel %vm1017_vm6, %v3411_v60, 0.0  ;;  %v1534_v62 = vpop.xlane.xlu1 %1533 }
 0x3e9   : > { %1299 = vadd.xlane.f32.xlu1 %v1298_v61  ;;  %v1535_v5 = vsub.f32 %v3386_v19, %v1534_v62 }
 0x3eb   : > { %v1536_v8 = vmul.f32 1.442695, %v1535_v5 }
 0x3ed   : > { %2968 = vpow2.f32 %v1536_v8 }
 0x3ef   : > { %v2967_v11 = vpop.eup %2966 }
 0x3f0   : > { %v1645_v6 = vpop.xlane.xlu0 %1644  ;;  %v1414_v13 = vsel %vm1017_vm6, %v2967_v11, 0.0 }
 0x3f1   : > { %v1646_v7 = vsub.f32 %v3390_v28, %v1645_v6 }
 0x3f4   : > { %v1189_v19 = vpop.permute.xlu0 %1188 }
 0x3f5   : > { %v1194_v35 = vsel %vm1081_vm7, %v1189_v19, 0 }
 0x3f7   : > { %1304 = vrot.lane.b32.xlu0 %v3313_v30, %s3077_s22  ;;  %v3425_v14 = vpop.eup %2968 }
 0x3f8   : > { %v1760_v63 = vpop.xlane.xlu1 %1759  ;;  %v1538_v15 = vsel %vm1017_vm6, %v3425_v14, 0.0 }
 0x3f9   : > { %v1761_v9 = vsub.f32 %v1753_v36, %v1760_v63 }
 0x3fa   : > { %1420 = vrot.lane.b32.xlu1 %v3313_v30, %s3078_s2  ;;  %v1647_v30 = vmul.f32 1.442695, %v1646_v7 }
 0x3fb   : > { %v1762_v10 = vmul.f32 1.442695, %v1761_v9 }
 0x3fc   : > { %v1077_v0 = vpop.permute.xlu1 %1076  ;;  %2970 = vpow2.f32 %v1647_v30 }
 0x3fd   : > { %v1083_v2 = vsel %vm1081_vm7, %v1077_v0, 0  ;;  %2972 = vpow2.f32 %v1762_v10 }
 0x3fe   : > { %2773 = vmatpush3.bf16.msra.mxu0 %v1083_v2 }
 0x3ff   : > { %2784 = vmatprep.subr.bf16.mxu0 %v3066_v20 }
 0x406   : > { %v3427_v12 = vpop.eup %2970 }
 0x407   : > { %v3431_v16 = vpop.eup %2972  ;;  %v1649_v17 = vsel %vm1017_vm6, %v3427_v12, 0.0 }
 0x408   : > { %v1764_v18 = vsel %vm1017_vm6, %v3431_v16, 0.0 }
 0x416   : > { %1415 = vadd.xlane.f32.xlu0 %v1414_v13 }
 0x41a   : > { %1539 = vadd.xlane.f32.xlu0 %v1538_v15 }
 0x41e   : > { %1650 = vadd.xlane.f32.xlu1 %v1649_v17  ;;  %1765 = vadd.xlane.f32.xlu0 %v1764_v18 }
 0x425   : > { %v1875_v21 = vpop.xlane.xlu0 %1874 }
 0x426   : > { %v1876_v24 = vsub.f32 %v3399_v45, %v1875_v21 }
 0x428   : > { %v1877_v25 = vmul.f32 1.442695, %v1876_v24 }
 0x42a   : > { %2974 = vpow2.f32 %v1877_v25 }
 0x42f   : > { %1655 = vrot.lane.b32.xlu1 %v3321_v33, %s3075_s0 }
 0x433   : > { %1770 = vrot.lane.b32.xlu1 %v3321_v33, %s3077_s22 }
 0x434   : > { %v3442_v26 = vpop.eup %2974 }
 0x435   : > { %v1879_v27 = vsel %vm1017_vm6, %v3442_v26, 0.0 }
 0x436   : > { %1880 = vadd.xlane.f32.xlu0 %v1879_v27 }
 0x437   : > { %1885 = vrot.lane.b32.xlu1 %v3321_v33, %s3078_s2  ;;  %s3687_s2 = sld [smem:[#allocation18_spill]] (!%p2686_p6) }
 0x44c   : > { %1544 = vrot.lane.b32.xlu0 %v3321_v33, %s3076_s21  ;;  %s3684_s21 = scalar_lea.vmem %s3640_s9, %s3214_s25 }
 0x466   : > { %v1072_v28 = vpop.xlane.xlu1 %1071 }
 0x467   : > { %2976 = vrcp.f32 %v1072_v28 }
 0x46e   : > { %v1184_v29 = vpop.xlane.xlu0 %1183 }
 0x46f   : > { %2978 = vrcp.f32 %v1184_v29 }
 0x471   : > { %v2977_v31 = vpop.eup %2976 }
 0x472   : > { %v1074_v32 = vmul.f32 %v2977_v31, %v3403_v53  ;;  %v1305_v38 = vpop.permute.xlu0 %1304 }
 0x473   : > { %v1310_v40 = vsel %vm1081_vm7, %v1305_v38, 0  ;;  %v2953_v38 = vld [vmem:[%s3229_s24 + $0x8] sm:$0xff]  }
 0x474   : > { %v1075_v34 = vpack.c.bf16 %v1074_v32, %v1074_v32 }
 0x476   : > { %2775 = vmatmul.mubr.msk.bf16.vlgmr.msra.gmra.mrb[4].mxu0 %vm1017_vm6, %v1075_v34  ;;  %v1300_v36 = vpop.xlane.xlu1 %1299 }
 0x477   : > { %2785 = vmatpush3.bf16.msra.mxu0 %v1194_v35  ;;  %2980 = vrcp.f32 %v1300_v36  ;;  %2786 = vmatprep.mubr.msk.bf16.mxu0 %vm3067_vm4, %v3066_v20 }
 0x478   : > { %2796 = vmatprep.subr.bf16.mxu0 %v3066_v20 }
 0x479   : > { %v2979_v33 = vpop.eup %2978 }
 0x47a   : > { %v1186_v37 = vmul.f32 %v2979_v33, %v3407_v59  ;;  %v1421_v43 = vpop.permute.xlu1 %1420 }
 0x47b   : > { %v1426_v45 = vsel %vm1081_vm7, %v1421_v43, 0 }
 0x47c   : > { %v1187_v39 = vpack.c.bf16 %v1186_v37, %v1186_v37  ;;  %v2952_v37 = vld [vmem:[%s3229_s24] sm:$0xff]   ;;  %s3688_s24 = sld [smem:[#allocation19_spill]] (!%p2686_p6) }
 0x47d   : > { %2863 = vmatpush3.bf16.msra.mxu1 %v2952_v37 }
 0x47e   : > { %2787 = vmatmul.mubr.msk.bf16.vlgmr.msra.gmra.mrb[8].mxu0 %vm1017_vm6, %v1187_v39  ;;  %2864 = vmatprep.subr.bf16.mxu1 %v3066_v20 }
 0x47f   : > { %2797 = vmatpush3.bf16.msra.mxu0 %v1310_v40  ;;  %2798 = vmatprep.mubr.msk.bf16.mxu0 %vm3067_vm4, %v3066_v20 }
 0x480   : > { %2808 = vmatprep.subr.bf16.mxu0 %v3066_v20 }
 0x481   : > { %v2981_v41 = vpop.eup %2980  ;;  %2865 = vmatpush3.bf16.msra.mxu1 %v2953_v38 }
 0x482   : > { %v1302_v42 = vmul.f32 %v2981_v41, %v3411_v60  ;;  %2878 = vmatprep.subr.bf16.mxu1 %v3066_v20 }
 0x484   : > { %v1303_v44 = vpack.c.bf16 %v1302_v42, %v1302_v42 }
 0x486   : > { %2799 = vmatmul.mubr.msk.bf16.vlgmr.msra.gmra.mrb[12].mxu0 %vm1017_vm6, %v1303_v44 }
 0x487   : > { %2809 = vmatpush3.bf16.msra.mxu0 %v1426_v45  ;;  %2810 = vmatprep.mubr.msk.bf16.mxu0 %vm3067_vm4, %v3066_v20 }
 0x488   : > { %2820 = vmatprep.subr.bf16.mxu0 %v3066_v20 }
 0x4a3   : > { %v1416_v46 = vpop.xlane.xlu0 %1415 }
 0x4a4   : > { %2982 = vrcp.f32 %v1416_v46 }
 0x4a7   : > { %v1540_v50 = vpop.xlane.xlu0 %1539 }
 0x4a8   : > { %2984 = vrcp.f32 %v1540_v50 }
 0x4ab   : > { %v1651_v51 = vpop.xlane.xlu1 %1650  ;;  %v1766_v52 = vpop.xlane.xlu0 %1765 }
 0x4ac   : > { %2986 = vrcp.f32 %v1651_v51 }
 0x4ad   : > { %2988 = vrcp.f32 %v1766_v52 }
 0x4ae   : > { %v2983_v47 = vpop.eup %2982 }
 0x4af   : > { %v1418_v48 = vmul.f32 %v2983_v47, %v2967_v11  ;;  %v1656_v59 = vpop.permute.xlu1 %1655 }
 0x4b0   : > { %v1661_v61 = vsel %vm1081_vm7, %v1656_v59, 0 }
 0x4b1   : > { %v1419_v49 = vpack.c.bf16 %v1418_v48, %v1418_v48 }
 0x4b2   : > { %v2985_v53 = vpop.eup %2984 }
 0x4b3   : > { %2811 = vmatmul.mubr.msk.bf16.vlgmr.msra.gmra.mrb[16].mxu0 %vm1017_vm6, %v1419_v49  ;;  %v1542_v55 = vmul.f32 %v2985_v53, %v3425_v14  ;;  %v1771_v63 = vpop.permute.xlu1 %1770 }
 0x4b4   : > { %2822 = vmatprep.mubr.msk.bf16.mxu0 %vm3067_vm4, %v3066_v20  ;;  %v1776_v2 = vsel %vm1081_vm7, %v1771_v63, 0 }
 0x4b5   : > { %v1543_v58 = vpack.c.bf16 %v1542_v55, %v1542_v55 }
 0x4b6   : > { %v2987_v60 = vpop.eup %2986 }
 0x4b7   : > { %v1653_v62 = vmul.f32 %v2987_v60, %v3427_v12  ;;  %v2989_v1 = vpop.eup %2988  ;;  %v1886_v4 = vpop.permute.xlu1 %1885 }
 0x4b8   : > { %v1768_v3 = vmul.f32 %v2989_v1, %v3431_v16  ;;  %v1891_v7 = vsel %vm1081_vm7, %v1886_v4, 0 }
 0x4b9   : > { %v1654_v0 = vpack.c.bf16 %v1653_v62, %v1653_v62 }
 0x4ba   : > { %v1769_v5 = vpack.c.bf16 %v1768_v3, %v1768_v3 }
 0x4c3   : > { %v1881_v54 = vpop.xlane.xlu0 %1880 }
 0x4c4   : > { %2990 = vrcp.f32 %v1881_v54 }
 0x4c7   : > { %v1545_v56 = vpop.permute.xlu0 %1544 }
 0x4c8   : > { %v1550_v57 = vsel %vm1081_vm7, %v1545_v56, 0  ;;  %v2668_v56 = vld [vmem:[%s3683_s29] ss:$0 sm:$0xff] }
 0x4c9   : > { %2821 = vmatpush3.bf16.msra.mxu0 %v1550_v57 }
 0x4ca   : > { %2832 = vmatprep.subr.bf16.mxu0 %v3066_v20 }
 0x4cc   : > { %2823 = vmatmul.mubr.msk.bf16.vlgmr.msra.gmra.mrb[20].mxu0 %vm1017_vm6, %v1543_v58 }
 0x4cd   : > { %2833 = vmatpush3.bf16.msra.mxu0 %v1661_v61  ;;  %2834 = vmatprep.mubr.msk.bf16.mxu0 %vm3067_vm4, %v3066_v20 }
 0x4ce   : > { %2844 = vmatprep.subr.bf16.mxu0 %v3066_v20  ;;  %v2991_v6 = vpop.eup %2990 }
 0x4cf   : > { %v1883_v8 = vmul.f32 %v2991_v6, %v3442_v26  ;;  %v2954_v6 = vld [vmem:[%s3246_s5] sm:$0xff]  }
 0x4d1   : > { %v1884_v9 = vpack.c.bf16 %v1883_v8, %v1883_v8  ;;  %v2957_v8 = vld [vmem:[%s3256_s20 + $0x8] sm:$0xff]  }
 0x4d4   : > { %2835 = vmatmul.mubr.msk.bf16.vlgmr.msra.gmra.mrb[24].mxu0 %vm1017_vm6, %v1654_v0 }
 0x4d5   : > { %2845 = vmatpush3.bf16.msra.mxu0 %v1776_v2  ;;  %2846 = vmatprep.mubr.msk.bf16.mxu0 %vm3067_vm4, %v3066_v20 }
 0x4d6   : > { %2856 = vmatprep.subr.bf16.mxu0 %v3066_v20 }
 0x4dc   : > { %2847 = vmatmul.mubr.msk.bf16.vlgmr.msra.gmra.mrb[28].mxu0 %vm1017_vm6, %v1769_v5 }
 0x4dd   : > { %2857 = vmatpush3.bf16.msra.mxu0 %v1891_v7  ;;  %2858 = vmatprep.mubr.msk.bf16.mxu0 %vm3067_vm4, %v3066_v20  ;;  %v2955_v7 = vld [vmem:[%s3246_s5 + $0x8] sm:$0xff]  }
 0x4de   : > { %2870 = vmatprep.subr.bf16.mxu0 %v3066_v20 }
 0x4e4   : > { %2859 = vmatmul.mubr.msk.bf16.vlgmr.msra.gmra.mrb[32].mxu0 %vm1017_vm6, %v1884_v9 }
 0x4e5   : > { %2874 = vmatprep.mubr.msk.bf16.mxu0 %vm3067_vm4, %v3066_v20  ;;  %2871 = vmatpush3.bf16.msra.mxu0 %v2954_v6 }
 0x4e6   : > { %2872 = vmatprep.subr.bf16.mxu0 %v3066_v20 }
 0x4e9   : > { %2873 = vmatpush3.bf16.msra.mxu0 %v2955_v7 }
 0x549   : > { %v1119_v30 = vpop.f32.mrb[4].mxu0 }
 0x54a   : > { %1125 = vst.msk [vmem:[#allocation3] sm:$0xff] %vm1017_vm6, %v1119_v30  ;;  %v2776_v10 = vpop.f32.mrb[5].mxu0 }
 0x54b   : > { %v1122_v11 = vpop.f32.mrb[6].mxu0 }
 0x54c   : > { %v2777_v13 = vpop.f32.mrb[7].mxu0 }
 0x551   : > { %v1230_v14 = vpop.f32.mrb[8].mxu0 }
 0x552   : > { %1237 = vrot.lane.b32.xlu1 %v1230_v14, %s3079_s28  ;;  %v2788_v12 = vpop.f32.mrb[9].mxu0 }
 0x553   : > { %v1233_v15 = vpop.f32.mrb[10].mxu0 }
 0x554   : > { %v2789_v16 = vpop.f32.mrb[11].mxu0 }
 0x559   : > { %v1346_v17 = vpop.f32.mrb[12].mxu0 }
 0x55a   : > { %1353 = vrot.lane.b32.xlu0 %v1346_v17, %s3080_s30  ;;  %v2800_v18 = vpop.f32.mrb[13].mxu0 }
 0x55b   : > { %v1349_v19 = vpop.f32.mrb[14].mxu0 }
 0x55c   : > { %v2801_v21 = vpop.f32.mrb[15].mxu0 }
 0x586   : > { %v1462_v24 = vpop.f32.mrb[16].mxu0 }
 0x587   : > { %1469 = vrot.lane.b32.xlu0 %v1462_v24, %s3081_s23  ;;  %v2812_v25 = vpop.f32.mrb[17].mxu0 }
 0x588   : > { %v1465_v26 = vpop.f32.mrb[18].mxu0  ;;  %v2672_v25 = vld [vmem:[%s3684_s21] ss:$0 sm:$0xff] }
 0x589   : > { %v2813_v27 = vpop.f32.mrb[19].mxu0 }
 0x59f   : > { %v1586_v28 = vpop.f32.mrb[20].mxu0 }
 0x5a0   : > { %1592 = vst.msk [vmem:[#allocation3 + $0x8] sm:$0xff] %vm1017_vm6, %v1586_v28  ;;  %v2824_v29 = vpop.f32.mrb[21].mxu0 }
 0x5a1   : > { %v1589_v31 = vpop.f32.mrb[22].mxu0 }
 0x5a2   : > { %v2825_v32 = vpop.f32.mrb[23].mxu0 }
 0x5a7   : > { %v1697_v34 = vpop.f32.mrb[24].mxu0 }
 0x5a8   : > { %1704 = vrot.lane.b32.xlu1 %v1697_v34, %s3079_s28  ;;  %v2836_v35 = vpop.f32.mrb[25].mxu0 }
 0x5a9   : > { %v1700_v36 = vpop.f32.mrb[26].mxu0 }
 0x5aa   : > { %v2837_v33 = vpop.f32.mrb[27].mxu0 }
 0x5af   : > { %v1812_v39 = vpop.f32.mrb[28].mxu0 }
 0x5b0   : > { %1819 = vrot.lane.b32.xlu1 %v1812_v39, %s3080_s30  ;;  %v2848_v40 = vpop.f32.mrb[29].mxu0  ;;  %s3685_s30 = scalar_lea.vmem %s3641_s10, %s3214_s25  ;;  %v2958_v39 = vld [vmem:[%s3256_s20 + $0x10] sm:$0xff]  }
 0x5b1   : > { %v1815_v41 = vpop.f32.mrb[30].mxu0  ;;  %v2673_v35 = vld [vmem:[%s3685_s30] ss:$0 sm:$0xff]  ;;  %v2959_v40 = vld [vmem:[%s3256_s20 + $0x18] sm:$0xff]  }
 0x5b2   : > { %v2849_v42 = vpop.f32.mrb[31].mxu0  ;;  %v2674_v41 = vld [vmem:[%s839_s7] ss:$0 sm:$0xff] }
 0x5b7   : > { %v1927_v43 = vpop.f32.mrb[32].mxu0 }
 0x5b8   : > { %1934 = vrot.lane.b32.xlu1 %v1927_v43, %s3081_s23  ;;  %v2860_v44 = vpop.f32.mrb[33].mxu0 }
 0x5b9   : > { %v1930_v45 = vpop.f32.mrb[34].mxu0 }
 0x5ba   : > { %v2861_v46 = vpop.f32.mrb[35].mxu0 }
 0x5c4   : > { %v1238_v47 = vpop.permute.xlu1 %1237 }
 0x5c5   : > { %1241 = vst.msk [vmem:[#allocation3] sm:$0xff] %vm1240_vm8, %v1238_v47 }
 0x5cc   : > { %v1354_v48 = vpop.permute.xlu0 %1353 }
 0x5cd   : > { %1357 = vst.msk [vmem:[#allocation3] sm:$0xff] %vm1356_vm9, %v1354_v48 }
 0x5f9   : > { %v1470_v49 = vpop.permute.xlu0 %1469 }
 0x5fa   : > { %1473 = vst.msk [vmem:[#allocation3] sm:$0xff] %vm1472_vm10, %v1470_v49 }
 0x601   : > { %v1938_v53 = vld [vmem:[#allocation3] sm:$0xff] }
 0x61a   : > { %v1705_v50 = vpop.permute.xlu1 %1704 }
 0x61b   : > { %1707 = vst.msk [vmem:[#allocation3 + $0x8] sm:$0xff] %vm1240_vm8, %v1705_v50 }
 0x622   : > { %v1820_v51 = vpop.permute.xlu1 %1819 }
 0x623   : > { %1822 = vst.msk [vmem:[#allocation3 + $0x8] sm:$0xff] %vm1356_vm9, %v1820_v51 }
 0x62a   : > { %v1935_v52 = vpop.permute.xlu1 %1934 }
 0x62b   : > { %1937 = vst.msk [vmem:[#allocation3 + $0x8] sm:$0xff] %vm1472_vm10, %v1935_v52 }
 0x632   : > { %v1939_v54 = vld [vmem:[#allocation3 + $0x8] sm:$0xff] }
 0x633   : > { %v1940_v55 = vpack.c.bf16 %v1939_v54, %v1938_v53 }
 0x635   : > { %2867 = vmatmul.mubr.msk.bf16.vlgmr.msra.gmra.mrb[32].mxu1 %vm961_vm5, %v1940_v55 }
 0x636   : > { %2886 = vmatprep.mubr.msk.bf16.mxu1 %vm3067_vm4, %v3066_v20 }
 0x708   : > { %v2001_v57 = vpop.f32.mrb[32].mxu1 }
 0x709   : > { %v2002_v59 = vadd.f32 %v2668_v56, %v2001_v57  ;;  %v2868_v58 = vpop.f32.mrb[33].mxu1 }
 0x70a   : > { %v2004_v60 = vpop.f32.mrb[34].mxu1 }
 0x70b   : > { %v2008_v61 = vadd.f32 %v2002_v59, %v3295_v22  ;;  %v2005_v62 = vadd.f32 %v2668_v56, %v2004_v60  ;;  %v2869_v63 = vpop.f32.mrb[35].mxu1 }
 0x70d   : > { %v2009_v0 = vadd.f32 %v2005_v62, %v3297_v23  ;;  %v2012_v1 = vsel %vm961_vm5, %v2008_v61, 0.0  ;;  %v2021_v2 = vmul.f32 %v2008_v61, %v2008_v61  ;;  %v2956_v23 = vld [vmem:[%s3256_s20] sm:$0xff]  }
 0x70e   : > { %2013 = vadd.xlane.f32.xlu0 %v2012_v1  ;;  %2879 = vmatpush3.bf16.msra.mxu1 %v2956_v23 }
 0x70f   : > { %v2015_v3 = vsel %vm961_vm5, %v2009_v0, 0.0  ;;  %v2023_v4 = vsel %vm961_vm5, %v2021_v2, 0.0  ;;  %v2022_v5 = vmul.f32 %v2009_v0, %v2009_v0  ;;  %2880 = vmatprep.subr.bf16.mxu1 %v3066_v20 }
 0x710   : > { %2016 = vadd.xlane.f32.xlu1 %v2015_v3 }
 0x711   : > { %v2026_v22 = vsel %vm961_vm5, %v2022_v5, 0.0 }
 0x712   : > { %2024 = vadd.xlane.f32.xlu0 %v2023_v4  ;;  %2881 = vmatpush3.bf16.msra.mxu1 %v2957_v8 }
 0x713   : > { %2882 = vmatprep.subr.bf16.mxu1 %v3066_v20 }
 0x716   : > { %2027 = vadd.xlane.f32.xlu0 %v2026_v22  ;;  %2883 = vmatpush3.bf16.msra.mxu1 %v2958_v39 }
 0x717   : > { %2884 = vmatprep.subr.bf16.mxu1 %v3066_v20  ;;  %v2678_v20 = vld [vmem:[%s847_s26] ss:$0 sm:$0xff] }
 0x71a   : > { %2885 = vmatpush3.bf16.msra.mxu1 %v2959_v40 }
 0x79b   : > { %v2014_v9 = vpop.xlane.xlu0 %2013 }
 0x79c   : > { %v2019_v30 = vmul.f32 0.03125, %v2014_v9 }
 0x79d   : > { %v2017_v10 = vpop.xlane.xlu1 %2016 }
 0x79e   : > { %v2031_v13 = vmul.f32 %v2019_v30, %v2019_v30  ;;  %v2020_v14 = vmul.f32 0.03125, %v2017_v10  ;;  %v2047_v28 = vsub.f32 %v2008_v61, %v2019_v30 }
 0x79f   : > { %v2025_v11 = vpop.xlane.xlu0 %2024 }
 0x7a0   : > { %v2029_v12 = vmul.f32 0.03125, %v2025_v11  ;;  %v2032_v17 = vmul.f32 %v2020_v14, %v2020_v14  ;;  %v2048_v31 = vsub.f32 %v2009_v0, %v2020_v14 }
 0x7a2   : > { %v2033_v15 = vsub.f32 %v2029_v12, %v2031_v13  ;;  %v2684_v13 = vld [vmem:[%s850_s4] ss:$0 sm:$0xff] }
 0x7a3   : > { %v2028_v16 = vpop.xlane.xlu0 %2027 }
 0x7a4   : > { %v2035_v18 = vadd.f32 1e-05, %v2033_v15  ;;  %v2030_v19 = vmul.f32 0.03125, %v2028_v16 }
 0x7a6   : > { %2992 = vrsqrt.f32 %v2035_v18  ;;  %v2034_v21 = vsub.f32 %v2030_v19, %v2032_v17  ;;  %v2685_v17 = vld [vmem:[%s853_s18] ss:$0 sm:$0xff]  ;;  %s3686_s18 = sld [smem:[#allocation17_spill]] (!%p2686_p6) }
 0x7a8   : > { %v2036_v24 = vadd.f32 1e-05, %v2034_v21 }
 0x7aa   : > { %2994 = vrsqrt.f32 %v2036_v24 }
 0x7b0   : > { %v2993_v26 = vpop.eup %2992 }
 0x7b1   : > { %v2045_v27 = vmul.f32 %v2993_v26, %v2672_v25 }
 0x7b3   : > { %v2049_v34 = vmul.f32 %v2047_v28, %v2045_v27  ;;  %v3000_v27 = vld [vmem:[%s3686_s18] sm:$0xff] (!%p2686_p6)   ;;  %v3082_v28 = vmov (!%p2686_p6), 0.0  }
 0x7b4   : > { %v2995_v29 = vpop.eup %2994  ;;  %2890 = vmatprep.subr.bf16.mxu0 (!%p2686_p6), %v3082_v28 }
 0x7b5   : > { %v2046_v32 = vmul.f32 %v2995_v29, %v2672_v25  ;;  %v2057_v33 = vadd.f32 %v2673_v35, %v2049_v34  ;;  %v3001_v29 = vld [vmem:[%s3686_s18 + $0x8] sm:$0xff] (!%p2686_p6)  }
 0x7b7   : > { %v2050_v36 = vmul.f32 %v2048_v31, %v2046_v32 }
 0x7b9   : > { %v2058_v37 = vadd.f32 %v2673_v35, %v2050_v36 }
 0x7bb   : > { %v2059_v38 = vpack.c.bf16 %v2058_v37, %v2057_v33 }
 0x7bd   : > { %2875 = vmatmul.mubr.msk.bf16.vlgmr.msra.gmra.mrb[36].mxu0 %vm961_vm5, %v2059_v38 }
 0x7be   : > { %2891 = vmatpush3.bf16.msra.mxu0 (!%p2686_p6), %v3000_v27  ;;  %2894 = vmatprep.mubr.msk.bf16.mxu0 (!%p2686_p6), %vm3083_vm12, %v3082_v28 }
 0x7bf   : > { %2892 = vmatprep.subr.bf16.mxu0 (!%p2686_p6), %v3082_v28 }
 0x7c2   : > { %2893 = vmatpush3.bf16.msra.mxu0 (!%p2686_p6), %v3001_v29 }
 0x890   : > { %v2120_v42 = vpop.f32.mrb[36].mxu0 }
 0x891   : > { %v2121_v43 = vadd.f32 %v2674_v41, %v2120_v42  ;;  %v2876_v44 = vpop.f32.mrb[37].mxu0 }
 0x892   : > { %v2123_v45 = vpop.f32.mrb[38].mxu0 }
 0x893   : > { %v2124_v46 = vadd.f32 %v2674_v41, %v2123_v45  ;;  %v2877_v47 = vpop.f32.mrb[39].mxu0  ;;  %v2127_v48 = vmax.f32 %v2121_v43, 0.0 }
 0x895   : > { %v2128_v49 = vmax.f32 %v2124_v46, 0.0 }
 0x897   : > { %v2129_v50 = vpack.c.bf16 %v2128_v49, %v2127_v48 }
 0x899   : > { %2887 = vmatmul.mubr.msk.bf16.vlgmr.msra.gmra.mrb[36].mxu1 %vm2169_vm11, %v2129_v50 }
 0x96c   : > { %v2207_v51 = vpop.f32.mrb[36].mxu1 }
 0x96d   : > { %v2208_v52 = vadd.f32 %v2678_v20, %v2207_v51  ;;  %v2888_v53 = vpop.f32.mrb[37].mxu1 }
 0x96e   : > { %v2210_v54 = vpop.f32.mrb[38].mxu1 }
 0x96f   : > { %v2214_v55 = vadd.f32 %v2208_v52, %v2057_v33  ;;  %v2211_v56 = vadd.f32 %v2678_v20, %v2210_v54  ;;  %v2889_v57 = vpop.f32.mrb[39].mxu1 }
 0x971   : > { %v2215_v59 = vadd.f32 %v2211_v56, %v2058_v37  ;;  %v2218_v58 = vsel %vm961_vm5, %v2214_v55, 0.0  ;;  %v2226_v60 = vmul.f32 %v2214_v55, %v2214_v55 }
 0x972   : > { %2219 = vadd.xlane.f32.xlu1 %v2218_v58 }
 0x973   : > { %v2221_v61 = vsel %vm961_vm5, %v2215_v59, 0.0  ;;  %v2227_v62 = vmul.f32 %v2215_v59, %v2215_v59  ;;  %v2228_v63 = vsel %vm961_vm5, %v2226_v60, 0.0 }
 0x974   : > { %2222 = vadd.xlane.f32.xlu0 %v2221_v61 }
 0x975   : > { %v2231_v0 = vsel %vm961_vm5, %v2227_v62, 0.0 }
 0x976   : > { %2229 = vadd.xlane.f32.xlu1 %v2228_v63 }
 0x978   : > { %2232 = vadd.xlane.f32.xlu0 %v2231_v0 }
 0x9ff   : > { %v2220_v1 = vpop.xlane.xlu1 %2219 }
 0xa00   : > { %v2224_v2 = vmul.f32 0.03125, %v2220_v1 }
 0xa01   : > { %v2223_v3 = vpop.xlane.xlu0 %2222 }
 0xa02   : > { %v2225_v4 = vmul.f32 0.03125, %v2223_v3  ;;  %v2236_v22 = vmul.f32 %v2224_v2, %v2224_v2  ;;  %v2252_v12 = vsub.f32 %v2214_v55, %v2224_v2 }
 0xa03   : > { %v2230_v5 = vpop.xlane.xlu1 %2229 }
 0xa04   : > { %v2234_v6 = vmul.f32 0.03125, %v2230_v5  ;;  %v2237_v23 = vmul.f32 %v2225_v4, %v2225_v4  ;;  %v2253_v18 = vsub.f32 %v2215_v59, %v2225_v4 }
 0xa05   : > { %v2233_v7 = vpop.xlane.xlu0 %2232 }
 0xa06   : > { %v2238_v8 = vsub.f32 %v2234_v6, %v2236_v22  ;;  %v2235_v9 = vmul.f32 0.03125, %v2233_v7 }
 0xa08   : > { %v2240_v30 = vadd.f32 1e-05, %v2238_v8  ;;  %v2239_v10 = vsub.f32 %v2235_v9, %v2237_v23 }
 0xa0a   : > { %2996 = vrsqrt.f32 %v2240_v30  ;;  %v2241_v11 = vadd.f32 1e-05, %v2239_v10 }
 0xa0c   : > { %2998 = vrsqrt.f32 %v2241_v11 }
 0xa14   : > { %v2997_v14 = vpop.eup %2996 }
 0xa15   : > { %v2250_v15 = vmul.f32 %v2997_v14, %v2684_v13 }
 0xa16   : > { %v2999_v16 = vpop.eup %2998 }
 0xa17   : > { %v2254_v19 = vmul.f32 %v2252_v12, %v2250_v15  ;;  %v2251_v21 = vmul.f32 %v2999_v16, %v2684_v13  ;;  %2269 = sbr.rel (%p2686_p6) target bundleno = 2862 (0xb2e), region = 104 }
 0xa19   : > { %v3562_v24 = vadd.f32 %v2685_v17, %v2254_v19  ;;  %v2255_v25 = vmul.f32 %v2253_v18, %v2251_v21  ;;  %v2687_v21 = vld [vmem:[%s3687_s2] ss:$0 sm:$0xff] (!%p2686_p6) }
 0xa1b   : > { %2264 = vst.msk [vmem:[#allocation2] sm:$0xff] %vm961_vm5, %v3562_v24  ;;  %v3566_v26 = vadd.f32 %v2685_v17, %v2255_v25  ;;  %v2270_v31 = vmul.f32 (!%p2686_p6), 0.70710677, %v3562_v24  ;;  %v2322_v11 = vmul.f32 (!%p2686_p6), 0.5, %v3562_v24 }
 0xa1d   : > { %2265 = vst.msk [vmem:[#allocation2 + $0x8] sm:$0xff] %vm961_vm5, %v3566_v26  ;;  %v2271_v32 = vmul.f32 (!%p2686_p6), 0.70710677, %v3566_v26  ;;  %v2272_v34 = vand.u32 (!%p2686_p6), 2147483647, %v2270_v31  ;;  %vm2316_vm13 = vcmp.ge.f32.partialorder (!%p2686_p6), %v2270_v31, 0.0 }
 0xa1e   : > { %v2323_v14 = vmul.f32 0.5, %v3566_v26 }
 0xa1f   : > { %v2273_v35 = vand.u32 2147483647, %v2271_v32  ;;  %v2274_v36 = vmul.f32 0.3275911, %v2272_v34  ;;  %v2304_v40 = vmul.f32 %v2272_v34, %v2272_v34  ;;  %vm2317_vm14 = vcmp.ge.f32.partialorder %v2271_v32, 0.0 }
 0xa21   : > { %v2275_v33 = vmul.f32 0.3275911, %v2273_v35  ;;  %v2276_v37 = vadd.f32 1.0, %v2274_v36  ;;  %v2305_v43 = vmul.f32 %v2273_v35, %v2273_v35  ;;  %v2306_v47 = vsub.f32 0.0, %v2304_v40 }
 0xa23   : > { %v2277_v38 = vadd.f32 1.0, %v2275_v33  ;;  %3002 = vrcp.f32 %v2276_v37  ;;  %v2307_v49 = vsub.f32 0.0, %v2305_v43  ;;  %v2308_v52 = vmul.f32 1.442695, %v2306_v47 }
 0xa25   : > { %3004 = vrcp.f32 %v2277_v38  ;;  %v2310_v54 = vmul.f32 1.442695, %v2307_v49 }
 0xa26   : > { %3006 = vpow2.f32 %v2308_v52 }
 0xa27   : > { %3008 = vpow2.f32 %v2310_v54 }
 0xa2d   : > { %v3003_v39 = vpop.eup %3002 }
 0xa2e   : > { %v2280_v42 = vmul.f32 %v3003_v39, %v2276_v37 }
 0xa2f   : > { %v3005_v41 = vpop.eup %3004 }
 0xa30   : > { %v2281_v44 = vmul.f32 %v3005_v41, %v2277_v38  ;;  %v2282_v45 = vsub.f32 2.0, %v2280_v42  ;;  %v3007_v3 = vpop.eup %3006 }
 0xa31   : > { %v3009_v5 = vpop.eup %3008 }
 0xa32   : > { %v2283_v46 = vsub.f32 2.0, %v2281_v44  ;;  %v2284_v48 = vmul.f32 %v3003_v39, %v2282_v45 }
 0xa34   : > { %v2285_v50 = vmul.f32 %v3005_v41, %v2283_v46  ;;  %v2286_v20 = vmul.f32 1.0614054, %v2284_v48 }
 0xa36   : > { %v2287_v51 = vmul.f32 1.0614054, %v2285_v50  ;;  %v2288_v53 = vadd.f32 -1.4531521, %v2286_v20 }
 0xa38   : > { %v2289_v55 = vadd.f32 -1.4531521, %v2287_v51  ;;  %v2290_v56 = vmul.f32 %v2288_v53, %v2284_v48 }
 0xa3a   : > { %v2291_v57 = vmul.f32 %v2289_v55, %v2285_v50  ;;  %v2292_v59 = vadd.f32 1.4214138, %v2290_v56 }
 0xa3c   : > { %v2293_v58 = vadd.f32 1.4214138, %v2291_v57  ;;  %v2294_v60 = vmul.f32 %v2292_v59, %v2284_v48 }
 0xa3e   : > { %v2295_v61 = vmul.f32 %v2293_v58, %v2285_v50  ;;  %v2296_v62 = vadd.f32 -0.28449672, %v2294_v60 }
 0xa40   : > { %v2297_v63 = vadd.f32 -0.28449672, %v2295_v61  ;;  %v2298_v0 = vmul.f32 %v2296_v62, %v2284_v48 }
 0xa42   : > { %v2299_v1 = vmul.f32 %v2297_v63, %v2285_v50  ;;  %v2300_v2 = vadd.f32 0.2548296, %v2298_v0 }
 0xa44   : > { %v2301_v4 = vadd.f32 0.2548296, %v2299_v1  ;;  %v2302_v22 = vmul.f32 %v2300_v2, %v2284_v48 }
 0xa46   : > { %v2303_v6 = vmul.f32 %v2301_v4, %v2285_v50  ;;  %v2312_v7 = vmul.f32 %v3007_v3, %v2302_v22 }
 0xa48   : > { %v2313_v23 = vmul.f32 %v3009_v5, %v2303_v6  ;;  %v2314_v8 = vsub.f32 1.0, %v2312_v7 }
 0xa4a   : > { %v2315_v9 = vsub.f32 1.0, %v2313_v23  ;;  %v2318_v30 = vsub.f32 0.0, %v2314_v8 }
 0xa4c   : > { %v2319_v10 = vsub.f32 0.0, %v2315_v9  ;;  %v2320_v13 = vsel %vm2316_vm13, %v2314_v8, %v2318_v30 }
 0xa4d   : > { %v2324_v15 = vadd.f32 1.0, %v2320_v13 }
 0xa4e   : > { %v2321_v12 = vsel %vm2317_vm14, %v2315_v9, %v2319_v10 }
 0xa4f   : > { %v2325_v16 = vadd.f32 1.0, %v2321_v12  ;;  %v2326_v17 = vmul.f32 %v2324_v15, %v2322_v11 }
 0xa51   : > { %v2327_v18 = vmul.f32 %v2325_v16, %v2323_v14  ;;  %2328 = vst.msk [vmem:[#allocation4] sm:$0xff] %vm961_vm5, %v2326_v17 }
 0xa53   : > { %2329 = vst.msk [vmem:[#allocation4 + $0x8] sm:$0xff] %vm961_vm5, %v2327_v18  ;;  %v2330_v19 = vpack.c.bf16 %v2327_v18, %v2326_v17 }
 0xa55   : > { %2895 = vmatmul.mubr.msk.bf16.vlgmr.msra.gmra.mrb[0].mxu0 %vm961_vm5, %v2330_v19 }
 0xb28   : > { %v2391_v24 = vpop.f32.mrb[0].mxu0 }
 0xb29   : > { %v2392_v25 = vadd.f32 %v2687_v21, %v2391_v24  ;;  %v2896_v27 = vpop.f32.mrb[1].mxu0 }
 0xb2a   : > { %v2394_v26 = vpop.f32.mrb[2].mxu0 }
 0xb2b   : > { %2398 = vst [vmem:[%s3688_s24] sm:$0xff] %v2392_v25  ;;  %v2395_v28 = vadd.f32 %v2687_v21, %v2394_v26  ;;  %v2897_v29 = vpop.f32.mrb[3].mxu0 }
 0xb2d   : > { %2399 = vst [vmem:[%s3688_s24 + $0x8] sm:$0xff] %v2395_v28 }
 0xb2e PF: > { %s3689_s7 = sld [smem:[#allocation8_spill]]  ;;  %s3084_s5 = smov [#allocation4]  }
 0xb2f   : > { %s2418_s4 = sshll.u32 %s3084_s5, 4  ;;  %s2419_s4 = int_to_ptr.vmem [resolvable:$true] %s2418_s4 }
 0xb30   : > { %s3010_s25 = scalar_lea.vmem %s2419_s4, 256  ;;  %p3017_p11 = scmp.lt.s32.totalorder %s2419_s4, %s2419_s4 }
 0xb31   : > { %p3011_p8 = scmp.ne.s32.totalorder %s2419_s4, %s3010_s25  ;;  %p3018_p12 = scmp.lt.s32.totalorder %s3010_s25, %s3010_s25 }
 0xb33   : > { %p3019_p13 = por %p3018_p12, %p3017_p11 }
 0xb34   : > { %s3690_s20 = sadd.s32 4294967295, %s3689_s7  }
 0xb35   : > { %p3595_p7 = scmp.eq.s32.totalorder %s3690_s20, 1 }
 0xb37   : > { %p3012_p9 = pnand %p3011_p8, %p3595_p7 }
 0xb39   : > { %p3013_p10 = pneg %p3012_p9 }
 0xb3b   : > { %p3020_p0 = pnand %p3019_p13, %p3013_p10 }
 0xb3d   : > { %3023 = shalt.err (!%p3020_p0)
}
 0xb3e   : > { %s3692_s1 = sld [smem:[#allocation20_spill]] }
 0xb44   : > { %s3693_s2 = smov %s3692_s1  ;;  %s3024_s22 = scalar_lea.hbm %s3692_s1, 256 }
 0xb45   : > { %p3025_p1 = scmp.ne.s32.totalorder %s3693_s2, %s3024_s22  ;;  %p3030_p4 = scmp.lt.u32.totalorder %s3024_s22, %s3693_s2 }
 0xb47   : > { %p3026_p2 = pnand %p3025_p1, %p3595_p7 }
 0xb49   : > { %p3027_p3 = pneg %p3026_p2 }
 0xb4b   : > { %p3032_p5 = pnand %p3030_p4, %p3027_p3 }
 0xb4d   : > { %3035 = shalt.err (!%p3032_p5)
}
 0xb4e   : > { %s3085_s7 = smov 128  }
 0xb4f   : > { %2899 = dma.vmem_to_hbm [thread:$0]  (%p3595_p7), %s2419_s4, 256, %s3693_s2, [#allocation5], %s3085_s7, %s3085_s7, %s3079_s28  }
 0xb50   : > { %3049 = dma.done.wait (%p3595_p7), [#allocation5], 256  }
 0xb51   : > { %3051 = vsyncadd (%p3595_p7), [#allocation5], 4294967040 }
 0xb52 PF: > { %s3694_s25 = sld [smem:[#allocation8_spill]]  ;;  %s3695_s1 = sld [smem:[#allocation7_spill]] }
 0xb53   : > { %s3696_s22 = sld [smem:[#allocation9_spill]] }
 0xb58   : > { %s32_s23 = sadd.s32 1, %s3694_s25  }
 0xb59   : > { %p29_p6 = scmp.ge.s32.totalorder %s32_s23, 4  }
 0xb5b   :  { %31 = sbr.rel (!%p29_p6) target bundleno = 14 (0xe), region = 184 }
 0xb62   :  { %2442 = vsyncpa [#allocation5], 1 }
 0xb63   :  { %2444 = vsyncpa [#allocation5 + $0x1], 1 }

</bundles_post_ra>
